<compile_context>
chip_gen: v5e
topology: v5e:2x2
jax: 0.10.0
libtpu: 0.0.40
codegen_flags: <defaults>
</compile_context>

<pallas_src>
import math

import jax
import jax.numpy as jnp
from jax.experimental import pallas as pl
from jax.experimental.pallas import tpu as pltpu


_LANE = 128
_VMEM_REF = pl.BlockSpec(memory_space=pltpu.MemorySpace.VMEM)
_VMEM_LIMIT_CACHE = None


def _round_up(x, m):
    return (x + m - 1) // m * m


def _vmem_limit():
    """Generation-aware scoped-VMEM budget (v7x has only 64 MiB/TC)."""
    global _VMEM_LIMIT_CACHE
    if _VMEM_LIMIT_CACHE is None:
        try:
            cap = int(pltpu.get_tpu_info().vmem_capacity_bytes)
        except Exception:
            cap = 64 * 1024 * 1024
        _VMEM_LIMIT_CACHE = min((cap * 4) // 5, 100 * 1024 * 1024)
    return _VMEM_LIMIT_CACHE


def _row_tile(M, K):
    """Row-tile: big tiles amortize per-step overhead; cap for the 33x33 branch."""
    if M <= 512:
        return M                    # single block == full dim: always legal
    return 256 if K >= 4096 else 512


# ----------------------------------------------------------------------------
# Fused pre-LSTM MLP: relu(relu(x @ W_in + b_in) @ W_fc1 + b_fc1)  -> bf16
# ----------------------------------------------------------------------------
def _mlp_pre_kernel(x_ref, w0_ref, b0_ref, w1_ref, b1_ref, o_ref):
    x = x_ref[...].astype(jnp.bfloat16)
    h = jnp.dot(x, w0_ref[...], preferred_element_type=jnp.float32) + b0_ref[...]
    h = jnp.maximum(h, 0.0)
    h = jnp.dot(h.astype(jnp.bfloat16), w1_ref[...],
                preferred_element_type=jnp.float32) + b1_ref[...]
    o_ref[...] = jnp.maximum(h, 0.0).astype(o_ref.dtype)


def mlp_pre(x, w0, b0, w1, b1):
    M, K = x.shape
    N1 = w1.shape[1]
    tm = _row_tile(M, K)
    grid = (pl.cdiv(M, tm),)
    return pl.pallas_call(
        _mlp_pre_kernel,
        out_shape=jax.ShapeDtypeStruct((M, N1), jnp.bfloat16),
        grid=grid,
        in_specs=[
            pl.BlockSpec((tm, K), lambda i: (i, 0)),   # pipelined row tile of x
            _VMEM_REF,                                 # W_in   (resident, 1 copy)
            _VMEM_REF,                                 # b_in
            _VMEM_REF,                                 # W_fc1
            _VMEM_REF,                                 # b_fc1
        ],
        out_specs=pl.BlockSpec((tm, N1), lambda i: (i, 0)),
        compiler_params=pltpu.CompilerParams(
            dimension_semantics=("parallel",),
            vmem_limit_bytes=_vmem_limit()),
    )(x, w0, b0, w1, b1)


# ----------------------------------------------------------------------------
# Fused post-LSTM MLP: fc4(relu(fc3(relu(fc2(x)))))  (fc4 padded to 128 cols)
# ----------------------------------------------------------------------------
def _mlp_post_kernel(x_ref, w2_ref, b2_ref, w3_ref, b3_ref, w4_ref, b4_ref,
                     o_ref):
    h = x_ref[...].astype(jnp.bfloat16)
    h = jnp.dot(h, w2_ref[...], preferred_element_type=jnp.float32) + b2_ref[...]
    h = jnp.maximum(h, 0.0)
    h = jnp.dot(h.astype(jnp.bfloat16), w3_ref[...],
                preferred_element_type=jnp.float32) + b3_ref[...]
    h = jnp.maximum(h, 0.0)
    h = jnp.dot(h.astype(jnp.bfloat16), w4_ref[...],
                preferred_element_type=jnp.float32) + b4_ref[...]
    o_ref[...] = h.astype(o_ref.dtype)


def mlp_post(x, w2, b2, w3, b3, w4, b4):
    M, K = x.shape
    N4 = w4.shape[1]
    tm = _row_tile(M, K)
    grid = (pl.cdiv(M, tm),)
    return pl.pallas_call(
        _mlp_post_kernel,
        out_shape=jax.ShapeDtypeStruct((M, N4), jnp.float32),
        grid=grid,
        in_specs=[
            pl.BlockSpec((tm, K), lambda i: (i, 0)),
            _VMEM_REF, _VMEM_REF,     # fc2
            _VMEM_REF, _VMEM_REF,     # fc3
            _VMEM_REF, _VMEM_REF,     # fc4 (padded to 128 cols)
        ],
        out_specs=pl.BlockSpec((tm, N4), lambda i: (i, 0)),
        compiler_params=pltpu.CompilerParams(
            dimension_semantics=("parallel",),
            vmem_limit_bytes=_vmem_limit()),
    )(x, w2, b2, w3, b3, w4, b4)


# ----------------------------------------------------------------------------
# Bidirectional LSTM over the row axis (unbatched, zero initial state).
# PyTorch gate order: i, f, g, o.  Combined bias = b_ih + b_hh per direction.
# wih_cat: (512, 8H) = [wih_f | wih_b], whh_cat: (H, 8H) = [whh_f | whh_b].
# ----------------------------------------------------------------------------
def _bilstm_kernel(x_ref, wih_ref, whh_ref, b_ref, o_ref, gx, hout):
    T = x_ref.shape[0]
    H = whh_ref.shape[0]
    x = x_ref[...].astype(jnp.bfloat16)

    # One big MXU pass: input projections for both directions, all timesteps.
    gx[...] = jnp.dot(x, wih_ref[...],
                      preferred_element_type=jnp.float32) + b_ref[...]

    def step(t, carry):
        h, c = carry                  # (2, H) f32: row 0 = fwd, row 1 = bwd
        tb = T - 1 - t
        # One matmul covers both directions; take the diagonal blocks.
        g2 = jnp.dot(h.astype(jnp.bfloat16), whh_ref[...],
                     preferred_element_type=jnp.float32)          # (2, 8H)
        gf = gx[pl.ds(t, 1), pl.ds(0, 4 * H)] + g2[0:1, 0:4 * H]
        gb = gx[pl.ds(tb, 1), pl.ds(4 * H, 4 * H)] + g2[1:2, 4 * H:8 * H]
        g = jnp.concatenate([gf, gb], axis=0)                     # (2, 4H)

        i_g = jax.nn.sigmoid(g[:, 0:H])
        f_g = jax.nn.sigmoid(g[:, H:2 * H])
        c_g = jnp.tanh(g[:, 2 * H:3 * H])
        o_g = jax.nn.sigmoid(g[:, 3 * H:4 * H])
        c_new = f_g * c + i_g * c_g
        h_new = o_g * jnp.tanh(c_new)

        # Lane offsets 0 and H are 128-aligned; dynamic sublane index only.
        # Store into the f32 scratch (packed-bf16 dynamic row stores avoided).
        hout[pl.ds(t, 1), pl.ds(0, H)] = h_new[0:1, :]
        hout[pl.ds(tb, 1), pl.ds(H, H)] = h_new[1:2, :]
        return (h_new, c_new)

    h0 = jnp.zeros((2, H), jnp.float32)
    c0 = jnp.zeros((2, H), jnp.float32)
    jax.lax.fori_loop(0, T, step, (h0, c0), unroll=2)

    o_ref[...] = hout[...].astype(o_ref.dtype)


def bilstm(x, p):
    T, _ = x.shape
    H = p["whh_cat"].shape[0]
    return pl.pallas_call(
        _bilstm_kernel,
        out_shape=jax.ShapeDtypeStruct((T, 2 * H), jnp.bfloat16),
        in_specs=[_VMEM_REF] * 4,
        out_specs=_VMEM_REF,
        scratch_shapes=[pltpu.VMEM((T, 8 * H), jnp.float32),   # gates
                        pltpu.VMEM((T, 2 * H), jnp.float32)],  # f32 hidden out
        compiler_params=pltpu.CompilerParams(vmem_limit_bytes=_vmem_limit()),
    )(x, p["wih_cat"], p["whh_cat"], p["b_cat"])


# ----------------------------------------------------------------------------
# Deterministic parameter init (mirrors nn.Linear / nn.LSTM default init).
# Weights stored pre-transposed (in, out), bf16 for the MXU; biases f32.
# ----------------------------------------------------------------------------
def _uniform(key, shape, bound):
    return jax.random.uniform(key, shape, jnp.float32, -bound, bound)


def _linear_params(key, fan_in, fan_out, pad_in=None, pad_out=None):
    kw, kb = jax.random.split(key)
    bound = 1.0 / math.sqrt(float(fan_in))
    w = _uniform(kw, (fan_in, fan_out), bound)
    b = _uniform(kb, (1, fan_out), bound)
    if pad_in is not None and pad_in > fan_in:
        w = jnp.pad(w, ((0, pad_in - fan_in), (0, 0)))    # zero rows: no-op math
    if pad_out is not None and pad_out > fan_out:
        w = jnp.pad(w, ((0, 0), (0, pad_out - fan_out)))  # junk cols sliced away
        b = jnp.pad(b, ((0, 0), (0, pad_out - fan_out)))
    return w.astype(jnp.bfloat16), b


def init_params(key):
    params = {"input": {}}
    grid_sizes = [2, 3, 4, 5, 6, 7, 8, 9, 10, 19, 33]
    keys = jax.random.split(key, len(grid_sizes) + 5)

    for k, n in zip(keys[:len(grid_sizes)], grid_sizes):
        in_sz = n * n * 6
        params["input"][in_sz] = _linear_params(
            k, in_sz, 1024, pad_in=_round_up(in_sz, _LANE))

    params["fc1"] = _linear_params(keys[-5], 1024, 512)
    params["fc2"] = _linear_params(keys[-4], 1024, 512)
    params["fc3"] = _linear_params(keys[-3], 512, 256)
    params["fc4"] = _linear_params(keys[-2], 256, 1, pad_out=_LANE)  # lane-dense

    # Bidirectional LSTM(512 -> 512). PyTorch stores weight_ih (4H, in) and
    # weight_hh (4H, H); we keep them transposed and concatenate directions:
    # wih_cat (512, 8H), whh_cat (H, 8H), b_cat (1, 8H) with b = b_ih + b_hh.
    H = 512
    bound = 1.0 / math.sqrt(float(H))
    lk = jax.random.split(keys[-1], 8)
    wih_f = _uniform(lk[0], (512, 4 * H), bound)
    whh_f = _uniform(lk[1], (H, 4 * H), bound)
    b_f = _uniform(lk[2], (1, 4 * H), bound) + _uniform(lk[3], (1, 4 * H), bound)
    wih_b = _uniform(lk[4], (512, 4 * H), bound)
    whh_b = _uniform(lk[5], (H, 4 * H), bound)
    b_b = _uniform(lk[6], (1, 4 * H), bound) + _uniform(lk[7], (1, 4 * H), bound)
    params["lstm"] = {
        "wih_cat": jnp.concatenate([wih_f, wih_b], axis=1).astype(jnp.bfloat16),
        "whh_cat": jnp.concatenate([whh_f, whh_b], axis=1).astype(jnp.bfloat16),
        "b_cat": jnp.concatenate([b_f, b_b], axis=1),
    }
    return params


# ----------------------------------------------------------------------------
# Forward pass (inputs_size dispatch is Python-level, like the nn.Module)
# ----------------------------------------------------------------------------
def rubik_forward(params, x, inputs_size):
    if inputs_size not in params["input"]:
        print("Error")
        return None
    x = x.reshape(-1, inputs_size)
    w_in, b_in = params["input"][inputs_size]
    k_pad = w_in.shape[0]
    if k_pad != inputs_size:
        x = jnp.pad(x, ((0, 0), (0, k_pad - inputs_size)))
    x = x.astype(jnp.bfloat16)          # activations travel in bf16

    h = mlp_pre(x, w_in, b_in, params["fc1"][0], params["fc1"][1])      # (T, 512) bf16
    h = bilstm(h, params["lstm"])                                       # (T, 1024) bf16
    out = mlp_post(h,
                   params["fc2"][0], params["fc2"][1],
                   params["fc3"][0], params["fc3"][1],
                   params["fc4"][0], params["fc4"][1])                  # (T, 128) f32
    return out[:, :1]                                                   # (T, 1)


if __name__ == "__main__":
    key = jax.random.PRNGKey(0)
    pkey, xkey = jax.random.split(key)
    params = init_params(pkey)

    inputs_size = 2 * 2 * 6  # 24 — uses the input_layer2 branch
    x = jax.random.normal(xkey, (8, 2, 2, 6), jnp.float32)

    out = rubik_forward(params, x, inputs_size)
    out = jax.block_until_ready(out)
    assert out.shape == (8, 1) and out.dtype == jnp.float32
    print("KERNEL_OK")
</pallas_src>

<mosaic_0001>
module attributes {stable_mosaic.version = 11 : i64} {
  func.func @_mlp_pre_kernel(%arg0: i32, %arg1: memref<8x128xbf16, #tpu.memory_space<vmem>>, %arg2: memref<128x1024xbf16, #tpu.memory_space<vmem>>, %arg3: memref<1x1024xf32, #tpu.memory_space<vmem>>, %arg4: memref<1024x512xbf16, #tpu.memory_space<vmem>>, %arg5: memref<1x512xf32, #tpu.memory_space<vmem>>, %arg6: memref<8x512xbf16, #tpu.memory_space<vmem>>) attributes {dimension_semantics = [#tpu.dimension_semantics<parallel>], iteration_bounds = array<i64: 1>, scalar_prefetch = 0 : i64, scratch_operands = 0 : i64, tpu.core_type = #tpu.core_type<tc>, window_params = [{transform_indices = @transform_0, window_bounds = array<i64: 8, 128>}, {pipeline_mode = #tpu.pipeline_mode<synchronous>, transform_indices = @transform_1, window_bounds = array<i64: 128, 1024>}, {pipeline_mode = #tpu.pipeline_mode<synchronous>, transform_indices = @transform_2, window_bounds = array<i64: 1, 1024>}, {pipeline_mode = #tpu.pipeline_mode<synchronous>, transform_indices = @transform_3, window_bounds = array<i64: 1024, 512>}, {pipeline_mode = #tpu.pipeline_mode<synchronous>, transform_indices = @transform_4, window_bounds = array<i64: 1, 512>}, {transform_indices = @transform_5, window_bounds = array<i64: 8, 512>}]} {
    %c0 = arith.constant 0 : index
    %c0_0 = arith.constant 0 : index
    %0 = vector.load %arg1[%c0, %c0_0] : memref<8x128xbf16, #tpu.memory_space<vmem>>, vector<8x128xbf16>
    %c0_1 = arith.constant 0 : index
    %c0_2 = arith.constant 0 : index
    %1 = vector.load %arg2[%c0_1, %c0_2] : memref<128x1024xbf16, #tpu.memory_space<vmem>>, vector<128x1024xbf16>
    %cst = arith.constant dense<0.000000e+00> : vector<8x1024xf32>
    %2 = tpu.matmul %0, %1, %cst {dimension_numbers = #tpu.dot_dimension_numbers<[1], [0], [0], [1], [0, 0, 1, 1], [], []>} : vector<8x128xbf16>, vector<128x1024xbf16>, vector<8x1024xf32> -> vector<8x1024xf32>
    %c0_3 = arith.constant 0 : index
    %c0_4 = arith.constant 0 : index
    %3 = vector.load %arg3[%c0_3, %c0_4] : memref<1x1024xf32, #tpu.memory_space<vmem>>, vector<1x1024xf32>
    %4 = vector.broadcast %3 : vector<1x1024xf32> to vector<8x1024xf32>
    %5 = arith.addf %2, %4 : vector<8x1024xf32>
    %cst_5 = arith.constant 0.000000e+00 : f32
    %6 = vector.broadcast %cst_5 : f32 to vector<8x1024xf32>
    %7 = arith.maximumf %5, %6 : vector<8x1024xf32>
    %8 = arith.truncf %7 : vector<8x1024xf32> to vector<8x1024xbf16>
    %c0_6 = arith.constant 0 : index
    %c0_7 = arith.constant 0 : index
    %9 = vector.load %arg4[%c0_6, %c0_7] : memref<1024x512xbf16, #tpu.memory_space<vmem>>, vector<1024x512xbf16>
    %cst_8 = arith.constant dense<0.000000e+00> : vector<8x512xf32>
    %10 = tpu.matmul %8, %9, %cst_8 {dimension_numbers = #tpu.dot_dimension_numbers<[1], [0], [0], [1], [0, 0, 1, 1], [], []>} : vector<8x1024xbf16>, vector<1024x512xbf16>, vector<8x512xf32> -> vector<8x512xf32>
    %c0_9 = arith.constant 0 : index
    %c0_10 = arith.constant 0 : index
    %11 = vector.load %arg5[%c0_9, %c0_10] : memref<1x512xf32, #tpu.memory_space<vmem>>, vector<1x512xf32>
    %12 = vector.broadcast %11 : vector<1x512xf32> to vector<8x512xf32>
    %13 = arith.addf %10, %12 : vector<8x512xf32>
    %cst_11 = arith.constant 0.000000e+00 : f32
    %14 = vector.broadcast %cst_11 : f32 to vector<8x512xf32>
    %15 = arith.maximumf %13, %14 : vector<8x512xf32>
    %16 = arith.truncf %15 : vector<8x512xf32> to vector<8x512xbf16>
    %c0_12 = arith.constant 0 : index
    %c0_13 = arith.constant 0 : index
    %17 = vector.load %arg6[%c0_12, %c0_13] : memref<8x512xbf16, #tpu.memory_space<vmem>>, vector<8x512xbf16>
    tpu.vector_store %arg6[%c0_12, %c0_13], %16 {strides = array<i32>} : memref<8x512xbf16, #tpu.memory_space<vmem>>, vector<8x512xbf16>,
    return
  }
  func.func @transform_0(%arg0: i32) -> (i32, i32) {
    %c0_i32 = arith.constant 0 : i32
    %c0_i32_0 = arith.constant 0 : i32
    return %arg0, %c0_i32 : i32, i32
  }
  func.func @transform_1(%arg0: i32) -> (i32, i32) {
    %c0_i32 = arith.constant 0 : i32
    %c0_i32_0 = arith.constant 0 : i32
    %c0_i32_1 = arith.constant 0 : i32
    return %c0_i32, %c0_i32_0 : i32, i32
  }
  func.func @transform_2(%arg0: i32) -> (i32, i32) {
    %c0_i32 = arith.constant 0 : i32
    %c0_i32_0 = arith.constant 0 : i32
    %c0_i32_1 = arith.constant 0 : i32
    return %c0_i32, %c0_i32_0 : i32, i32
  }
  func.func @transform_3(%arg0: i32) -> (i32, i32) {
    %c0_i32 = arith.constant 0 : i32
    %c0_i32_0 = arith.constant 0 : i32
    %c0_i32_1 = arith.constant 0 : i32
    return %c0_i32, %c0_i32_0 : i32, i32
  }
  func.func @transform_4(%arg0: i32) -> (i32, i32) {
    %c0_i32 = arith.constant 0 : i32
    %c0_i32_0 = arith.constant 0 : i32
    %c0_i32_1 = arith.constant 0 : i32
    return %c0_i32, %c0_i32_0 : i32, i32
  }
  func.func @transform_5(%arg0: i32) -> (i32, i32) {
    %c0_i32 = arith.constant 0 : i32
    %c0_i32_0 = arith.constant 0 : i32
    return %arg0, %c0_i32 : i32, i32
  }
}

</mosaic_0001>

<bundles_post_ra>
// kernel: tpu_custom_call.1
= control target key start
LH: loop header
LB: loop body
LE: loop exit
PB: predicated region body
PF: predicated region fallthrough
CT: control target
= control target key end

     0   :  { %10 = vsyncpa [#allocation3], 0  ;;  %s4520_s0 = inlined_call_operand.hbm [shape: bf16[8,128], index: 0, kind: input, shape index: {}]   ;;  %s4521_s1 = inlined_call_operand.hbm [shape: bf16[128,1024], index: 1, kind: input, shape index: {}]   ;;  %s4522_s2 = inlined_call_operand.hbm [shape: f32[1,1024], index: 2, kind: input, shape index: {}]   ;;  %s4523_s3 = inlined_call_operand.hbm [shape: bf16[1024,512], index: 3, kind: input, shape index: {}]   ;;  %s4524_s4 = inlined_call_operand.hbm [shape: f32[1,512], index: 4, kind: input, shape index: {}]   ;;  %s4525_s5 = inlined_call_operand.hbm [shape: bf16[8,512], index: 5, kind: output, shape index: {}]  }
   0x1   :  { %11 = vsyncpa [#allocation6], 0 }
   0x2   :  { %12 = vsyncpa [#allocation9], 0  ;;  %s29_s20 = sshll.u32 %s4521_s1, 4  ;;  %s30_s20 = int_to_ptr.hbm [resolvable:$true] %s29_s20 }
   0x3   :  { %13 = vsyncpa [#allocation4], 0  ;;  %s4367_s21 = smov [#allocation5]   ;;  %s53_s25 = sshll.u32 %s4523_s3, 4  ;;  %s54_s25 = int_to_ptr.hbm [resolvable:$true] %s53_s25 }
   0x4   :  { %s31_s22 = sshll.u32 %s4367_s21, 4  ;;  %s4368_s26 = smov 512   ;;  %s32_s22 = int_to_ptr.vmem [resolvable:$true] %s31_s22 }
   0x5   :  { %s4369_s27 = smov 32   ;;  %s4370_s28 = smov [#allocation8]  }
   0x6   :  { %37 = dma.hbm_to_vmem [thread:$0]  %s30_s20, 8192, %s32_s22, [#allocation6], %s4368_s26, %s4368_s26, %s4369_s27  }
   0x7   :  { %s55_s29 = sshll.u32 %s4370_s28, 4  ;;  %s4371_s30 = smov 256   ;;  %s56_s29 = int_to_ptr.vmem [resolvable:$true] %s55_s29 }
   0x8   :  { %s4372_s6 = smov 16   ;;  %s19_s8 = sshll.u32 %s4520_s0, 4  ;;  %s20_s8 = int_to_ptr.hbm [resolvable:$true] %s19_s8 }
   0x9   :  { %61 = dma.hbm_to_vmem [thread:$0]  %s54_s25, 32768, %s56_s29, [#allocation9], %s4371_s30, %s4371_s30, %s4372_s6  }
   0xa   :  { %s4373_s9 = smov [#allocation2]   ;;  %s43_s12 = sshll.u32 %s4522_s2, 4  ;;  %s44_s12 = int_to_ptr.hbm [resolvable:$true] %s43_s12 }
   0xb   :  { %s21_s10 = sshll.u32 %s4373_s9, 4  ;;  %s4374_s13 = smov [#allocation7]   ;;  %s22_s10 = int_to_ptr.vmem [resolvable:$true] %s21_s10 }
   0xc   :  { %24 = dma.hbm_to_vmem [thread:$0]  %s20_s8, 64, %s22_s10, [#allocation3]  }
   0xd   :  { %s45_s14 = sshll.u32 %s4374_s13, 4  ;;  %s67_s17 = sshll.u32 %s4524_s4, 4  ;;  %s46_s14 = int_to_ptr.vmem [resolvable:$true] %s45_s14  ;;  %s68_s17 = int_to_ptr.hbm [resolvable:$true] %s67_s17 }
   0xe   :  { %48 = dma.hbm_to_vmem [thread:$0]  %s44_s12, 128, %s46_s14, [#allocation6]  }
   0xf   :  { %s4375_s0 = smov [#allocation10]  }
  0x10   :  { %s69_s18 = sshll.u32 %s4375_s0, 4  ;;  %s70_s18 = int_to_ptr.vmem [resolvable:$true] %s69_s18 }
  0x11   :  { %72 = dma.hbm_to_vmem [thread:$0]  %s68_s17, 64, %s70_s18, [#allocation9]  }
  0x12   :  { %4359 = dma.done.wait [#allocation3], 64  }
  0x13   :  { %4360 = vsyncadd [#allocation3], 4294967232 }
  0x14   :  { %4361 = dma.done.wait [#allocation6], 8320  }
  0x15   :  { %4362 = vsyncadd [#allocation6], 4294958976 }
  0x16   :  { %4363 = dma.done.wait [#allocation9], 32832  }
  0x17   :  { %4364 = vsyncadd [#allocation9], 4294934464  ;;  %v2831_v0 = vld [vmem:[#allocation5 + $0x1c0] sm:$0xf]  ;;  %v3941_v2 = vld [vmem:[#allocation5 + $0x1c4] sm:$0xf] }
  0x18   :  { %v3945_v1 = vld [vmem:[#allocation5 + $0x1dc] sm:$0xf0]  ;;  %v2833_v4 = vld [vmem:[#allocation5 + $0x1e0] sm:$0xf0]  ;;  %v2839_v5 = vld [vmem:[#allocation5 + $0x1c8] sm:$0xf] }
  0x19   :  { %v2832_v3 = vor.u32 %v3945_v1, %v2831_v0  ;;  %v3946_v6 = vld [vmem:[#allocation5 + $0x1e4] sm:$0xf0]  ;;  %v2836_v7 = vor.u32 %v3941_v2, %v2833_v4  ;;  %v3942_v9 = vld [vmem:[#allocation5 + $0x1cc] sm:$0xf]  ;;  %v2799_v11 = vld [vmem:[#allocation5 + $0x180] sm:$0xf] }
  0x1a   :  { %v2840_v8 = vor.u32 %v3946_v6, %v2839_v5  ;;  %v2841_v10 = vld [vmem:[#allocation5 + $0x1e8] sm:$0xf0]  ;;  %v3937_v13 = vld [vmem:[#allocation5 + $0x19c] sm:$0xf0]  ;;  %v3933_v14 = vld [vmem:[#allocation5 + $0x184] sm:$0xf] }
  0x1b   :  { %496 = vmatpush.bf16.msra.mxu0 %v2832_v3  ;;  %v2844_v12 = vor.u32 %v3942_v9, %v2841_v10  ;;  %v2801_v15 = vld [vmem:[#allocation5 + $0x1a0] sm:$0xf0]  ;;  %509 = vmatpush.bf16.msra.mxu1 %v2836_v7  ;;  %v2800_v16 = vor.u32 %v3937_v13, %v2799_v11  ;;  %v2807_v18 = vld [vmem:[#allocation5 + $0x188] sm:$0xf]  ;;  %v3934_v20 = vld [vmem:[#allocation5 + $0x18c] sm:$0xf] }
  0x1c   :  { %522 = vmatpush.bf16.msra.mxu2 %v2840_v8  ;;  %v2804_v17 = vor.u32 %v3933_v14, %v2801_v15  ;;  %v3938_v19 = vld [vmem:[#allocation5 + $0x1a4] sm:$0xf0]  ;;  %v2809_v22 = vld [vmem:[#allocation5 + $0x1a8] sm:$0xf0]  ;;  %v2767_v23 = vld [vmem:[#allocation5 + $0x140] sm:$0xf] }
  0x1d   :  { %535 = vmatpush.bf16.msra.mxu3 %v2844_v12  ;;  %v2808_v21 = vor.u32 %v3938_v19, %v2807_v18  ;;  %v3929_v24 = vld [vmem:[#allocation5 + $0x15c] sm:$0xf0]  ;;  %v2812_v25 = vor.u32 %v3934_v20, %v2809_v22  ;;  %v3925_v26 = vld [vmem:[#allocation5 + $0x144] sm:$0xf]  ;;  %v2775_v28 = vld [vmem:[#allocation5 + $0x148] sm:$0xf] }
  0x1e   :  { %v2769_v27 = vld [vmem:[#allocation5 + $0x160] sm:$0xf0]  ;;  %v2768_v29 = vor.u32 %v3929_v24, %v2767_v23  ;;  %v3930_v30 = vld [vmem:[#allocation5 + $0x164] sm:$0xf0]  ;;  %v3926_v31 = vld [vmem:[#allocation5 + $0x14c] sm:$0xf] }
  0x1f   :  { %497 = vmatpush.bf16.msra.mxu0 %v2800_v16  ;;  %v2777_v32 = vld [vmem:[#allocation5 + $0x168] sm:$0xf0]  ;;  %510 = vmatpush.bf16.msra.mxu1 %v2804_v17  ;;  %v2772_v33 = vor.u32 %v3925_v26, %v2769_v27  ;;  %v2776_v34 = vor.u32 %v3930_v30, %v2775_v28  ;;  %v2735_v35 = vld [vmem:[#allocation5 + $0x100] sm:$0xf]  ;;  %v3917_v37 = vld [vmem:[#allocation5 + $0x104] sm:$0xf] }
  0x20   :  { %523 = vmatpush.bf16.msra.mxu2 %v2808_v21  ;;  %v3921_v36 = vld [vmem:[#allocation5 + $0x11c] sm:$0xf0]  ;;  %v2780_v38 = vor.u32 %v3926_v31, %v2777_v32  ;;  %v2737_v39 = vld [vmem:[#allocation5 + $0x120] sm:$0xf0]  ;;  %v2743_v40 = vld [vmem:[#allocation5 + $0x108] sm:$0xf] }
  0x21   :  { %536 = vmatpush.bf16.msra.mxu3 %v2812_v25  ;;  %v3922_v41 = vld [vmem:[#allocation5 + $0x124] sm:$0xf0]  ;;  %v3918_v42 = vld [vmem:[#allocation5 + $0x10c] sm:$0xf]  ;;  %v2736_v44 = vor.u32 %v3921_v36, %v2735_v35  ;;  %v2740_v45 = vor.u32 %v3917_v37, %v2737_v39  ;;  %v2703_v47 = vld [vmem:[#allocation5 + $0xc0] sm:$0xf] }
  0x22   :  { %v2745_v43 = vld [vmem:[#allocation5 + $0x128] sm:$0xf0]  ;;  %v2744_v46 = vor.u32 %v3922_v41, %v2743_v40  ;;  %v3913_v48 = vld [vmem:[#allocation5 + $0xdc] sm:$0xf0]  ;;  %v3909_v49 = vld [vmem:[#allocation5 + $0xc4] sm:$0xf] }
  0x23   :  { %498 = vmatpush.bf16.msra.mxu0 %v2768_v29  ;;  %511 = vmatpush.bf16.msra.mxu1 %v2772_v33  ;;  %v2748_v50 = vor.u32 %v3918_v42, %v2745_v43  ;;  %v2705_v51 = vld [vmem:[#allocation5 + $0xe0] sm:$0xf0]  ;;  %v2711_v52 = vld [vmem:[#allocation5 + $0xc8] sm:$0xf]  ;;  %v3910_v54 = vld [vmem:[#allocation5 + $0xcc] sm:$0xf]  ;;  %v2704_v56 = vor.u32 %v3913_v48, %v2703_v47 }
  0x24   :  { %524 = vmatpush.bf16.msra.mxu2 %v2776_v34  ;;  %v3914_v53 = vld [vmem:[#allocation5 + $0xe4] sm:$0xf0]  ;;  %v2713_v55 = vld [vmem:[#allocation5 + $0xe8] sm:$0xf0]  ;;  %v2708_v57 = vor.u32 %v3909_v49, %v2705_v51  ;;  %v2671_v59 = vld [vmem:[#allocation5 + $0x80] sm:$0xf] }
  0x25   :  { %537 = vmatpush.bf16.msra.mxu3 %v2780_v38  ;;  %v2712_v58 = vor.u32 %v3914_v53, %v2711_v52  ;;  %v3905_v60 = vld [vmem:[#allocation5 + $0x9c] sm:$0xf0]  ;;  %v3901_v61 = vld [vmem:[#allocation5 + $0x84] sm:$0xf]  ;;  %v2716_v62 = vor.u32 %v3910_v54, %v2713_v55  ;;  %v2679_v0 = vld [vmem:[#allocation5 + $0x88] sm:$0xf] }
  0x26   :  { %v2673_v63 = vld [vmem:[#allocation5 + $0xa0] sm:$0xf0]  ;;  %v3906_v1 = vld [vmem:[#allocation5 + $0xa4] sm:$0xf0]  ;;  %v3902_v2 = vld [vmem:[#allocation5 + $0x8c] sm:$0xf]  ;;  %v2672_v4 = vor.u32 %v3905_v60, %v2671_v59 }
  0x27   :  { %499 = vmatpush.bf16.msra.mxu0 %v2736_v44  ;;  %512 = vmatpush.bf16.msra.mxu1 %v2740_v45  ;;  %v2681_v3 = vld [vmem:[#allocation5 + $0xa8] sm:$0xf0]  ;;  %v2676_v5 = vor.u32 %v3901_v61, %v2673_v63  ;;  %v2680_v6 = vor.u32 %v3906_v1, %v2679_v0  ;;  %v2639_v7 = vld [vmem:[#allocation5 + $0x40] sm:$0xf]  ;;  %v3893_v9 = vld [vmem:[#allocation5 + $0x44] sm:$0xf] }
  0x28   :  { %525 = vmatpush.bf16.msra.mxu2 %v2744_v46  ;;  %v3897_v8 = vld [vmem:[#allocation5 + $0x5c] sm:$0xf0]  ;;  %v2684_v10 = vor.u32 %v3902_v2, %v2681_v3  ;;  %v2641_v11 = vld [vmem:[#allocation5 + $0x60] sm:$0xf0]  ;;  %v2647_v12 = vld [vmem:[#allocation5 + $0x48] sm:$0xf] }
  0x29   :  { %538 = vmatpush.bf16.msra.mxu3 %v2748_v50  ;;  %v3898_v13 = vld [vmem:[#allocation5 + $0x64] sm:$0xf0]  ;;  %v3894_v14 = vld [vmem:[#allocation5 + $0x4c] sm:$0xf]  ;;  %v2640_v16 = vor.u32 %v3897_v8, %v2639_v7  ;;  %v2607_v17 = vld [vmem:[#allocation5] sm:$0xf]  ;;  %v2644_v19 = vor.u32 %v3893_v9, %v2641_v11 }
  0x2a   :  { %v2649_v15 = vld [vmem:[#allocation5 + $0x68] sm:$0xf0]  ;;  %v3889_v18 = vld [vmem:[#allocation5 + $0x1c] sm:$0xf0]  ;;  %v2648_v20 = vor.u32 %v3898_v13, %v2647_v12  ;;  %v3885_v21 = vld [vmem:[#allocation5 + $0x4] sm:$0xf] }
  0x2b   :  { %500 = vmatpush.bf16.msra.mxu0 %v2704_v56  ;;  %513 = vmatpush.bf16.msra.mxu1 %v2708_v57  ;;  %v2609_v22 = vld [vmem:[#allocation5 + $0x20] sm:$0xf0]  ;;  %v2615_v23 = vld [vmem:[#allocation5 + $0x8] sm:$0xf]  ;;  %v2652_v24 = vor.u32 %v3894_v14, %v2649_v15  ;;  %v3886_v26 = vld [vmem:[#allocation5 + $0xc] sm:$0xf]  ;;  %v2608_v31 = vor.u32 %v3889_v18, %v2607_v17 }
  0x2c   :  { %526 = vmatpush.bf16.msra.mxu2 %v2712_v58  ;;  %v3890_v25 = vld [vmem:[#allocation5 + $0x24] sm:$0xf0]  ;;  %v2617_v27 = vld [vmem:[#allocation5 + $0x28] sm:$0xf0]  ;;  %v2847_v28 = vld [vmem:[#allocation5 + $0x1d0] sm:$0xf]  ;;  %v2612_v35 = vor.u32 %v3885_v21, %v2609_v22 }
  0x2d   :  { %539 = vmatpush.bf16.msra.mxu3 %v2716_v62  ;;  %v3947_v29 = vld [vmem:[#allocation5 + $0x1ec] sm:$0xf0]  ;;  %v3943_v30 = vld [vmem:[#allocation5 + $0x1d4] sm:$0xf]  ;;  %v2855_v33 = vld [vmem:[#allocation5 + $0x1d8] sm:$0xf]  ;;  %v2616_v36 = vor.u32 %v3890_v25, %v2615_v23  ;;  %v2620_v39 = vor.u32 %v3886_v26, %v2617_v27 }
  0x2e   :  { %v2849_v32 = vld [vmem:[#allocation5 + $0x1f0] sm:$0xf0]  ;;  %v3948_v34 = vld [vmem:[#allocation5 + $0x1f4] sm:$0xf0]  ;;  %v3944_v37 = vld [vmem:[#allocation5 + $0x1dc] sm:$0xf]  ;;  %v2848_v40 = vor.u32 %v3947_v29, %v2847_v28 }
  0x2f   :  { %501 = vmatpush.bf16.msra.mxu0 %v2672_v4  ;;  %514 = vmatpush.bf16.msra.mxu1 %v2676_v5  ;;  %v2857_v38 = vld [vmem:[#allocation5 + $0x1f8] sm:$0xf0]  ;;  %v2852_v41 = vor.u32 %v3943_v30, %v2849_v32  ;;  %v2856_v42 = vor.u32 %v3948_v34, %v2855_v33  ;;  %v2815_v43 = vld [vmem:[#allocation5 + $0x190] sm:$0xf]  ;;  %v3935_v45 = vld [vmem:[#allocation5 + $0x194] sm:$0xf] }
  0x30   :  { %527 = vmatpush.bf16.msra.mxu2 %v2680_v6  ;;  %v3939_v44 = vld [vmem:[#allocation5 + $0x1ac] sm:$0xf0]  ;;  %v2860_v46 = vor.u32 %v3944_v37, %v2857_v38  ;;  %v2817_v47 = vld [vmem:[#allocation5 + $0x1b0] sm:$0xf0]  ;;  %v2823_v48 = vld [vmem:[#allocation5 + $0x198] sm:$0xf] }
  0x31   :  { %540 = vmatpush.bf16.msra.mxu3 %v2684_v10  ;;  %v3940_v49 = vld [vmem:[#allocation5 + $0x1b4] sm:$0xf0]  ;;  %v4422_v50 = vld [vmem:[#allocation2] sm:$0xf]  ;;  %v2816_v53 = vor.u32 %v3939_v44, %v2815_v43  ;;  %v2820_v54 = vor.u32 %v3935_v45, %v2817_v47  ;;  %v2783_v56 = vld [vmem:[#allocation5 + $0x150] sm:$0xf] }
  0x32   :  { %v3936_v51 = vld [vmem:[#allocation5 + $0x19c] sm:$0xf]  ;;  %v2824_v55 = vor.u32 %v3940_v49, %v2823_v48  ;;  %v3931_v57 = vld [vmem:[#allocation5 + $0x16c] sm:$0xf0]  ;;  %v3927_v58 = vld [vmem:[#allocation5 + $0x154] sm:$0xf] }
  0x33   :  { %502 = vmatpush.bf16.msra.mxu0 %v2640_v16  ;;  %515 = vmatpush.bf16.msra.mxu1 %v2644_v19  ;;  %v2825_v52 = vld [vmem:[#allocation5 + $0x1b8] sm:$0xf0]  ;;  %v2785_v60 = vld [vmem:[#allocation5 + $0x170] sm:$0xf0]  ;;  %v2791_v61 = vld [vmem:[#allocation5 + $0x158] sm:$0xf]  ;;  %v2784_v1 = vor.u32 %v3931_v57, %v2783_v56 }
  0x34   :  { %528 = vmatpush.bf16.msra.mxu2 %v2648_v20  ;;  %v2828_v59 = vor.u32 %v3936_v51, %v2825_v52  ;;  %v3932_v62 = vld [vmem:[#allocation5 + $0x174] sm:$0xf0]  ;;  %v3928_v63 = vld [vmem:[#allocation5 + $0x15c] sm:$0xf]  ;;  %v2788_v2 = vor.u32 %v3927_v58, %v2785_v60  ;;  %v2751_v4 = vld [vmem:[#allocation5 + $0x110] sm:$0xf] }
  0x35   :  { %541 = vmatpush.bf16.msra.mxu3 %v2652_v24  ;;  %v2793_v0 = vld [vmem:[#allocation5 + $0x178] sm:$0xf0]  ;;  %v2792_v3 = vor.u32 %v3932_v62, %v2791_v61  ;;  %v3923_v5 = vld [vmem:[#allocation5 + $0x12c] sm:$0xf0]  ;;  %v3919_v6 = vld [vmem:[#allocation5 + $0x114] sm:$0xf] }
  0x36   :  { %v2796_v7 = vor.u32 %v3928_v63, %v2793_v0  ;;  %v2753_v8 = vld [vmem:[#allocation5 + $0x130] sm:$0xf0]  ;;  %v2759_v9 = vld [vmem:[#allocation5 + $0x118] sm:$0xf]  ;;  %v3920_v11 = vld [vmem:[#allocation5 + $0x11c] sm:$0xf]  ;;  %v2752_v13 = vor.u32 %v3923_v5, %v2751_v4 }
  0x37   :  { %503 = vmatpush.bf16.msra.mxu0 %v2608_v31  ;;  %516 = vmatpush.bf16.msra.mxu1 %v2612_v35  ;;  %v3924_v10 = vld [vmem:[#allocation5 + $0x134] sm:$0xf0]  ;;  %v2761_v12 = vld [vmem:[#allocation5 + $0x138] sm:$0xf0]  ;;  %v2756_v14 = vor.u32 %v3919_v6, %v2753_v8  ;;  %v2719_v16 = vld [vmem:[#allocation5 + $0xd0] sm:$0xf] }
  0x38   :  { %529 = vmatpush.bf16.msra.mxu2 %v2616_v36  ;;  %v2760_v15 = vor.u32 %v3924_v10, %v2759_v9  ;;  %v3915_v17 = vld [vmem:[#allocation5 + $0xec] sm:$0xf0]  ;;  %v3911_v18 = vld [vmem:[#allocation5 + $0xd4] sm:$0xf]  ;;  %v2764_v19 = vor.u32 %v3920_v11, %v2761_v12  ;;  %v2727_v21 = vld [vmem:[#allocation5 + $0xd8] sm:$0xf] }
  0x39   :  { %542 = vmatpush.bf16.msra.mxu3 %v2620_v39  ;;  %v2721_v20 = vld [vmem:[#allocation5 + $0xf0] sm:$0xf0]  ;;  %v3916_v22 = vld [vmem:[#allocation5 + $0xf4] sm:$0xf0]  ;;  %v3912_v23 = vld [vmem:[#allocation5 + $0xdc] sm:$0xf]  ;;  %v2720_v25 = vor.u32 %v3915_v17, %v2719_v16 }
  0x3a   :  { %504 = vmatmul.bf16.vlgmr.msra.gmra.mxu0 %v4422_v50  ;;  %517 = vmatmul.bf16.vlgmr.msra.gmra.mxu1 %v4422_v50  ;;  %v2729_v24 = vld [vmem:[#allocation5 + $0xf8] sm:$0xf0]  ;;  %v2724_v26 = vor.u32 %v3911_v18, %v2721_v20  ;;  %v2728_v27 = vor.u32 %v3916_v22, %v2727_v21  ;;  %v2687_v28 = vld [vmem:[#allocation5 + $0x90] sm:$0xf]  ;;  %v3903_v30 = vld [vmem:[#allocation5 + $0x94] sm:$0xf] }
  0x3b   :  { %548 = vmatpush.bf16.msrb.mxu0 %v2848_v40  ;;  %561 = vmatpush.bf16.msrb.mxu1 %v2852_v41  ;;  %v3907_v29 = vld [vmem:[#allocation5 + $0xac] sm:$0xf0]  ;;  %v2732_v31 = vor.u32 %v3912_v23, %v2729_v24  ;;  %v2689_v32 = vld [vmem:[#allocation5 + $0xb0] sm:$0xf0]  ;;  %v2695_v33 = vld [vmem:[#allocation5 + $0x98] sm:$0xf] }
  0x3c   :  { %574 = vmatpush.bf16.msrb.mxu2 %v2856_v42  ;;  %543 = vmatmul.bf16.vlgmr.msra.gmra.mxu3 %v4422_v50  ;;  %v3908_v34 = vld [vmem:[#allocation5 + $0xb4] sm:$0xf0]  ;;  %v3904_v35 = vld [vmem:[#allocation5 + $0x9c] sm:$0xf]  ;;  %v2688_v37 = vor.u32 %v3907_v29, %v2687_v28  ;;  %v2692_v38 = vor.u32 %v3903_v30, %v2689_v32  ;;  %v2655_v40 = vld [vmem:[#allocation5 + $0x50] sm:$0xf] }
  0x3d   :  { %587 = vmatpush.bf16.msrb.mxu3 %v2860_v46  ;;  %530 = vmatmul.bf16.vlgmr.msra.gmra.mxu2 %v4422_v50  ;;  %v2697_v36 = vld [vmem:[#allocation5 + $0xb8] sm:$0xf0]  ;;  %v2696_v39 = vor.u32 %v3908_v34, %v2695_v33  ;;  %v3899_v41 = vld [vmem:[#allocation5 + $0x6c] sm:$0xf0]  ;;  %v3895_v42 = vld [vmem:[#allocation5 + $0x54] sm:$0xf] }
  0x3e   :  { %v2700_v43 = vor.u32 %v3904_v35, %v2697_v36  ;;  %v2657_v44 = vld [vmem:[#allocation5 + $0x70] sm:$0xf0]  ;;  %v2663_v45 = vld [vmem:[#allocation5 + $0x58] sm:$0xf]  ;;  %v3896_v47 = vld [vmem:[#allocation5 + $0x5c] sm:$0xf]  ;;  %v2656_v49 = vor.u32 %v3899_v41, %v2655_v40 }
  0x3f   :  { %549 = vmatpush.bf16.msrb.mxu0 %v2816_v53  ;;  %562 = vmatpush.bf16.msrb.mxu1 %v2820_v54  ;;  %v3900_v46 = vld [vmem:[#allocation5 + $0x74] sm:$0xf0]  ;;  %v2665_v48 = vld [vmem:[#allocation5 + $0x78] sm:$0xf0]  ;;  %v2623_v51 = vld [vmem:[#allocation5 + $0x10] sm:$0xf]  ;;  %v2660_v52 = vor.u32 %v3895_v42, %v2657_v44 }
  0x40   :  { %575 = vmatpush.bf16.msrb.mxu2 %v2824_v55  ;;  %v2664_v53 = vor.u32 %v3900_v46, %v2663_v45  ;;  %v3891_v54 = vld [vmem:[#allocation5 + $0x2c] sm:$0xf0]  ;;  %v3887_v55 = vld [vmem:[#allocation5 + $0x14] sm:$0xf]  ;;  %v2668_v57 = vor.u32 %v3896_v47, %v2665_v48  ;;  %v2631_v58 = vld [vmem:[#allocation5 + $0x18] sm:$0xf] }
  0x41   :  { %588 = vmatpush.bf16.msrb.mxu3 %v2828_v59  ;;  %v2625_v56 = vld [vmem:[#allocation5 + $0x30] sm:$0xf0]  ;;  %v3892_v59 = vld [vmem:[#allocation5 + $0x34] sm:$0xf0]  ;;  %v3888_v60 = vld [vmem:[#allocation5 + $0x1c] sm:$0xf]  ;;  %v2624_v0 = vor.u32 %v3891_v54, %v2623_v51 }
  0x42   :  { %v2633_v61 = vld [vmem:[#allocation5 + $0x38] sm:$0xf0]  ;;  %v2975_v62 = vld [vmem:[#allocation8 + $0xe0] sm:$0xf]  ;;  %v3979_v63 = vld [vmem:[#allocation8 + $0xec] sm:$0xf0]  ;;  %v2632_v4 = vor.u32 %v3892_v59, %v2631_v58 }
  0x43   :  { %550 = vmatpush.bf16.msrb.mxu0 %v2784_v1  ;;  %563 = vmatpush.bf16.msrb.mxu1 %v2788_v2  ;;  %v3103_v1 = vld [vmem:[#allocation8 + $0x1e0] sm:$0xf]  ;;  %v4011_v2 = vld [vmem:[#allocation8 + $0x1ec] sm:$0xf0]  ;;  %v2636_v5 = vor.u32 %v3888_v60, %v2633_v61  ;;  %v2976_v6 = vor.u32 %v3979_v63, %v2975_v62  ;;  %s4376_s2 = smov [#allocation11]   ;;  %s2593_s21 = sshll.u32 %s4525_s5, 4  ;;  %s2594_s21 = int_to_ptr.hbm [resolvable:$true] %s2593_s21 }
  0x44   :  { %576 = vmatpush.bf16.msrb.mxu2 %v2792_v3  ;;  %v2628_v3 = vor.u32 %v3887_v55, %v2625_v56  ;;  %v3231_v8 = vld [vmem:[#allocation8 + $0x2e0] sm:$0xf]  ;;  %v4043_v9 = vld [vmem:[#allocation8 + $0x2ec] sm:$0xf0]  ;;  %v3104_v10 = vor.u32 %v4011_v2, %v3103_v1  ;;  %s2591_s4 = sshll.u32 %s4376_s2, 4  ;;  %s2592_s4 = int_to_ptr.vmem [resolvable:$true] %s2591_s4 }
  0x45   :  { %589 = vmatpush.bf16.msrb.mxu3 %v2796_v7  ;;  %v2959_v7 = vld [vmem:[#allocation8 + $0xc0] sm:$0xf]  ;;  %v3975_v11 = vld [vmem:[#allocation8 + $0xcc] sm:$0xf0]  ;;  %v3232_v16 = vor.u32 %v4043_v9, %v3231_v8 }
  0x46   :  { %v3359_v12 = vld [vmem:[#allocation8 + $0x3e0] sm:$0xf]  ;;  %v2960_v17 = vor.u32 %v3975_v11, %v2959_v7  ;;  %v4039_v21 = vld [vmem:[#allocation8 + $0x2cc] sm:$0xf0] }
  0x47   :  { %551 = vmatpush.bf16.msrb.mxu0 %v2752_v13  ;;  %564 = vmatpush.bf16.msrb.mxu1 %v2756_v14  ;;  %v4075_v13 = vld [vmem:[#allocation8 + $0x3ec] sm:$0xf0]  ;;  %v3087_v14 = vld [vmem:[#allocation8 + $0x1c0] sm:$0xf] }
  0x48   :  { %577 = vmatpush.bf16.msrb.mxu2 %v2760_v15  ;;  %v4007_v15 = vld [vmem:[#allocation8 + $0x1cc] sm:$0xf0]  ;;  %v3360_v18 = vor.u32 %v4075_v13, %v3359_v12  ;;  %v3215_v20 = vld [vmem:[#allocation8 + $0x2c0] sm:$0xf] }
  0x49   :  { %590 = vmatpush.bf16.msrb.mxu3 %v2764_v19  ;;  %v2943_v19 = vld [vmem:[#allocation8 + $0xa0] sm:$0xf]  ;;  %v3088_v22 = vor.u32 %v4007_v15, %v3087_v14  ;;  %v3971_v23 = vld [vmem:[#allocation8 + $0xac] sm:$0xf0]  ;;  %v3216_v28 = vor.u32 %v4039_v21, %v3215_v20 }
  0x4a   :  { %v3343_v24 = vld [vmem:[#allocation8 + $0x3c0] sm:$0xf]  ;;  %v2944_v29 = vor.u32 %v3971_v23, %v2943_v19  ;;  %v4035_v33 = vld [vmem:[#allocation8 + $0x2ac] sm:$0xf0] }
  0x4b   :  { %552 = vmatpush.bf16.msrb.mxu0 %v2720_v25  ;;  %565 = vmatpush.bf16.msrb.mxu1 %v2724_v26  ;;  %v4071_v25 = vld [vmem:[#allocation8 + $0x3cc] sm:$0xf0]  ;;  %v3071_v26 = vld [vmem:[#allocation8 + $0x1a0] sm:$0xf] }
  0x4c   :  { %578 = vmatpush.bf16.msrb.mxu2 %v2728_v27  ;;  %v4003_v27 = vld [vmem:[#allocation8 + $0x1ac] sm:$0xf0]  ;;  %v3344_v30 = vor.u32 %v4071_v25, %v3343_v24  ;;  %v3199_v32 = vld [vmem:[#allocation8 + $0x2a0] sm:$0xf] }
  0x4d   :  { %591 = vmatpush.bf16.msrb.mxu3 %v2732_v31  ;;  %v2927_v31 = vld [vmem:[#allocation8 + $0x80] sm:$0xf]  ;;  %v3072_v34 = vor.u32 %v4003_v27, %v3071_v26  ;;  %v3967_v35 = vld [vmem:[#allocation8 + $0x8c] sm:$0xf0]  ;;  %v3200_v40 = vor.u32 %v4035_v33, %v3199_v32 }
  0x4e   :  { %v3327_v36 = vld [vmem:[#allocation8 + $0x3a0] sm:$0xf]  ;;  %v4031_v44 = vld [vmem:[#allocation8 + $0x28c] sm:$0xf0] }
  0x4f   :  { %553 = vmatpush.bf16.msrb.mxu0 %v2688_v37  ;;  %566 = vmatpush.bf16.msrb.mxu1 %v2692_v38  ;;  %v4067_v37 = vld [vmem:[#allocation8 + $0x3ac] sm:$0xf0]  ;;  %v3055_v38 = vld [vmem:[#allocation8 + $0x180] sm:$0xf] }
  0x50   :  { %579 = vmatpush.bf16.msrb.mxu2 %v2696_v39  ;;  %v3999_v39 = vld [vmem:[#allocation8 + $0x18c] sm:$0xf0]  ;;  %v3328_v41 = vor.u32 %v4067_v37, %v3327_v36  ;;  %v2911_v42 = vld [vmem:[#allocation8 + $0x60] sm:$0xf] }
  0x51   :  { %592 = vmatpush.bf16.msrb.mxu3 %v2700_v43  ;;  %v3183_v43 = vld [vmem:[#allocation8 + $0x280] sm:$0xf]  ;;  %v3056_v45 = vor.u32 %v3999_v39, %v3055_v38  ;;  %v3963_v46 = vld [vmem:[#allocation8 + $0x6c] sm:$0xf0] }
  0x52   :  { %v3311_v47 = vld [vmem:[#allocation8 + $0x380] sm:$0xf]  ;;  %v4063_v48 = vld [vmem:[#allocation8 + $0x38c] sm:$0xf0] }
  0x53   :  { %554 = vmatpush.bf16.msrb.mxu0 %v2656_v49  ;;  %567 = vmatpush.bf16.msrb.mxu1 %v2660_v52  ;;  %v3039_v49 = vld [vmem:[#allocation8 + $0x160] sm:$0xf]  ;;  %v3995_v51 = vld [vmem:[#allocation8 + $0x16c] sm:$0xf0]  ;;  %v3184_v52 = vor.u32 %v4031_v44, %v3183_v43  ;;  %v3312_v54 = vor.u32 %v4063_v48, %v3311_v47 }
  0x54   :  { %580 = vmatpush.bf16.msrb.mxu2 %v2664_v53  ;;  %v2912_v53 = vor.u32 %v3963_v46, %v2911_v42  ;;  %v2895_v55 = vld [vmem:[#allocation8 + $0x40] sm:$0xf]  ;;  %v3040_v58 = vor.u32 %v3995_v51, %v3039_v49  ;;  %v3959_v59 = vld [vmem:[#allocation8 + $0x4c] sm:$0xf0] }
  0x55   :  { %593 = vmatpush.bf16.msrb.mxu3 %v2668_v57  ;;  %v3167_v56 = vld [vmem:[#allocation8 + $0x260] sm:$0xf]  ;;  %v4027_v57 = vld [vmem:[#allocation8 + $0x26c] sm:$0xf0]  ;;  %v2896_v1 = vor.u32 %v3959_v59, %v2895_v55 }
  0x56   :  { %v3295_v60 = vld [vmem:[#allocation8 + $0x360] sm:$0xf]  ;;  %v4059_v61 = vld [vmem:[#allocation8 + $0x36c] sm:$0xf0] }
  0x57   :  { %555 = vmatpush.bf16.msrb.mxu0 %v2624_v0  ;;  %568 = vmatpush.bf16.msrb.mxu1 %v2628_v3  ;;  %v3023_v62 = vld [vmem:[#allocation8 + $0x140] sm:$0xf]  ;;  %v3991_v63 = vld [vmem:[#allocation8 + $0x14c] sm:$0xf0]  ;;  %v3168_v0 = vor.u32 %v4027_v57, %v3167_v56  ;;  %v3296_v2 = vor.u32 %v4059_v61, %v3295_v60 }
  0x58   :  { %581 = vmatpush.bf16.msrb.mxu2 %v2632_v4  ;;  %v2879_v3 = vld [vmem:[#allocation8 + $0x20] sm:$0xf]  ;;  %v3955_v7 = vld [vmem:[#allocation8 + $0x2c] sm:$0xf0] }
  0x59   :  { %594 = vmatpush.bf16.msrb.mxu3 %v2636_v5  ;;  %v3151_v4 = vld [vmem:[#allocation8 + $0x240] sm:$0xf]  ;;  %v4023_v5 = vld [vmem:[#allocation8 + $0x24c] sm:$0xf0]  ;;  %v2880_v14 = vor.u32 %v3955_v7, %v2879_v3 }
  0x5a   :  { %556 = vmatmul.bf16.vlgmr.msrb.gmra.mxu0 %v4422_v50  ;;  %569 = vmatmul.bf16.vlgmr.msrb.gmra.mxu1 %v4422_v50  ;;  %v3279_v8 = vld [vmem:[#allocation8 + $0x340] sm:$0xf]  ;;  %v4055_v9 = vld [vmem:[#allocation8 + $0x34c] sm:$0xf0]  ;;  %v3152_v12 = vor.u32 %v4023_v5, %v3151_v4 }
  0x5b   :  { %2162 = vmatpush.bf16.msra.mxu0 %v2976_v6  ;;  %2175 = vmatpush.bf16.msra.mxu1 %v3104_v10  ;;  %v3024_v6 = vor.u32 %v3991_v63, %v3023_v62  ;;  %v3007_v10 = vld [vmem:[#allocation8 + $0x120] sm:$0xf]  ;;  %v3987_v11 = vld [vmem:[#allocation8 + $0x12c] sm:$0xf0]  ;;  %v3280_v15 = vor.u32 %v4055_v9, %v3279_v8 }
  0x5c   :  { %582 = vmatmul.bf16.vlgmr.msrb.gmra.mxu2 %v4422_v50  ;;  %595 = vmatmul.bf16.vlgmr.msrb.gmra.mxu3 %v4422_v50  ;;  %v2928_v50 = vor.u32 %v3967_v35, %v2927_v31  ;;  %v2863_v13 = vld [vmem:[#allocation8] sm:$0xf]  ;;  %v3008_v19 = vor.u32 %v3987_v11, %v3007_v10  ;;  %v3983_v23 = vld [vmem:[#allocation8 + $0x10c] sm:$0xf0] }
  0x5d   :  { %2188 = vmatpush.bf16.msra.mxu2 %v3232_v16  ;;  %2201 = vmatpush.bf16.msra.mxu3 %v3360_v18  ;;  %v3951_v16 = vld [vmem:[#allocation8 + $0xc] sm:$0xf0]  ;;  %v2991_v20 = vld [vmem:[#allocation8 + $0x100] sm:$0xf] }
  0x5e   :  { %v4019_v18 = vld [vmem:[#allocation8 + $0x22c] sm:$0xf0]  ;;  %v3263_v21 = vld [vmem:[#allocation8 + $0x320] sm:$0xf]  ;;  %v2992_v35 = vor.u32 %v3983_v23, %v2991_v20 }
  0x5f   :  { %2163 = vmatpush.bf16.msra.mxu0 %v2960_v17  ;;  %2176 = vmatpush.bf16.msra.mxu1 %v3088_v22  ;;  %v3135_v17 = vld [vmem:[#allocation8 + $0x220] sm:$0xf]  ;;  %v4051_v22 = vld [vmem:[#allocation8 + $0x32c] sm:$0xf0] }
  0x60   :  { %v3487_v24 = vld [vmem:[#allocation8 + $0x4e0] sm:$0xf]  ;;  %v4107_v25 = vld [vmem:[#allocation8 + $0x4ec] sm:$0xf0] }
  0x61   :  { %2189 = vmatpush.bf16.msra.mxu2 %v3216_v28  ;;  %2202 = vmatpush.bf16.msra.mxu3 %v3344_v30  ;;  %v3615_v26 = vld [vmem:[#allocation8 + $0x5e0] sm:$0xf]  ;;  %v4139_v27 = vld [vmem:[#allocation8 + $0x5ec] sm:$0xf0]  ;;  %v3136_v28 = vor.u32 %v4019_v18, %v3135_v17  ;;  %v3264_v30 = vor.u32 %v4051_v22, %v3263_v21  ;;  %v3488_v36 = vor.u32 %v4107_v25, %v3487_v24 }
  0x62   :  { %v3471_v31 = vld [vmem:[#allocation8 + $0x4c0] sm:$0xf]  ;;  %v4015_v33 = vld [vmem:[#allocation8 + $0x20c] sm:$0xf0] }
  0x63   :  { %2164 = vmatpush.bf16.msra.mxu0 %v2944_v29  ;;  %2177 = vmatpush.bf16.msra.mxu1 %v3072_v34  ;;  %v2864_v29 = vor.u32 %v3951_v16, %v2863_v13  ;;  %v3119_v32 = vld [vmem:[#allocation8 + $0x200] sm:$0xf]  ;;  %v4047_v37 = vld [vmem:[#allocation8 + $0x30c] sm:$0xf0] }
  0x64   :  { %v3247_v34 = vld [vmem:[#allocation8 + $0x300] sm:$0xf]  ;;  %v4171_v39 = vld [vmem:[#allocation8 + $0x6ec] sm:$0xf0] }
  0x65   :  { %2190 = vmatpush.bf16.msra.mxu2 %v3200_v40  ;;  %2203 = vmatpush.bf16.msra.mxu3 %v3328_v41  ;;  %v3743_v38 = vld [vmem:[#allocation8 + $0x6e0] sm:$0xf]  ;;  %v3616_v40 = vor.u32 %v4139_v27, %v3615_v26  ;;  %v4203_v42 = vld [vmem:[#allocation8 + $0x7ec] sm:$0xf0]  ;;  %v3248_v46 = vor.u32 %v4047_v37, %v3247_v34 }
  0x66   :  { %v3871_v41 = vld [vmem:[#allocation8 + $0x7e0] sm:$0xf]  ;;  %v4135_v44 = vld [vmem:[#allocation8 + $0x5cc] sm:$0xf0]  ;;  %v3744_v47 = vor.u32 %v4171_v39, %v3743_v38 }
  0x67   :  { %2165 = vmatpush.bf16.msra.mxu0 %v2928_v50  ;;  %2178 = vmatpush.bf16.msra.mxu1 %v3056_v45  ;;  %v4103_v50 = vld [vmem:[#allocation8 + $0x4cc] sm:$0xf0]  ;;  %v3599_v43 = vld [vmem:[#allocation8 + $0x5c0] sm:$0xf]  ;;  %v3120_v45 = vor.u32 %v4015_v33, %v3119_v32  ;;  %v3872_v49 = vor.u32 %v4203_v42, %v3871_v41 }
  0x68   :  { %v3472_v48 = vor.u32 %v4103_v50, %v3471_v31  ;;  %v3455_v51 = vld [vmem:[#allocation8 + $0x4a0] sm:$0xf]  ;;  %v4099_v55 = vld [vmem:[#allocation8 + $0x4ac] sm:$0xf0] }
  0x69   :  { %2191 = vmatpush.bf16.msra.mxu2 %v3184_v52  ;;  %2204 = vmatpush.bf16.msra.mxu3 %v3312_v54  ;;  %v3727_v52 = vld [vmem:[#allocation8 + $0x6c0] sm:$0xf]  ;;  %v3600_v54 = vor.u32 %v4135_v44, %v3599_v43  ;;  %v4199_v57 = vld [vmem:[#allocation8 + $0x7cc] sm:$0xf0]  ;;  %v3456_v61 = vor.u32 %v4099_v55, %v3455_v51 }
  0x6a   :  { %v3855_v56 = vld [vmem:[#allocation8 + $0x7c0] sm:$0xf]  ;;  %v4131_v59 = vld [vmem:[#allocation8 + $0x5ac] sm:$0xf0] }
  0x6b   :  { %2166 = vmatpush.bf16.msra.mxu0 %v2912_v53  ;;  %2179 = vmatpush.bf16.msra.mxu1 %v3040_v58  ;;  %v4167_v53 = vld [vmem:[#allocation8 + $0x6cc] sm:$0xf0]  ;;  %v3583_v58 = vld [vmem:[#allocation8 + $0x5a0] sm:$0xf]  ;;  %v3856_v62 = vor.u32 %v4199_v57, %v3855_v56 }
  0x6c   :  { %v3728_v60 = vor.u32 %v4167_v53, %v3727_v52  ;;  %v3439_v63 = vld [vmem:[#allocation8 + $0x480] sm:$0xf]  ;;  %v4095_v3 = vld [vmem:[#allocation8 + $0x48c] sm:$0xf0] }
  0x6d   :  { %2192 = vmatpush.bf16.msra.mxu2 %v3168_v0  ;;  %2205 = vmatpush.bf16.msra.mxu3 %v3296_v2  ;;  %v3711_v0 = vld [vmem:[#allocation8 + $0x6a0] sm:$0xf]  ;;  %v3584_v2 = vor.u32 %v4131_v59, %v3583_v58  ;;  %v4195_v5 = vld [vmem:[#allocation8 + $0x7ac] sm:$0xf0]  ;;  %v3440_v9 = vor.u32 %v4095_v3, %v3439_v63 }
  0x6e   :  { %v3839_v4 = vld [vmem:[#allocation8 + $0x7a0] sm:$0xf]  ;;  %v4127_v7 = vld [vmem:[#allocation8 + $0x58c] sm:$0xf0] }
  0x6f   :  { %2167 = vmatpush.bf16.msra.mxu0 %v2896_v1  ;;  %2180 = vmatpush.bf16.msra.mxu1 %v3024_v6  ;;  %v4163_v1 = vld [vmem:[#allocation8 + $0x6ac] sm:$0xf0]  ;;  %v3567_v6 = vld [vmem:[#allocation8 + $0x580] sm:$0xf]  ;;  %v3840_v10 = vor.u32 %v4195_v5, %v3839_v4 }
  0x70   :  { %v3712_v8 = vor.u32 %v4163_v1, %v3711_v0  ;;  %v3423_v11 = vld [vmem:[#allocation8 + $0x460] sm:$0xf]  ;;  %v4159_v13 = vld [vmem:[#allocation8 + $0x68c] sm:$0xf0] }
  0x71   :  { %2193 = vmatpush.bf16.msra.mxu2 %v3152_v12  ;;  %2206 = vmatpush.bf16.msra.mxu3 %v3280_v15  ;;  %v3695_v12 = vld [vmem:[#allocation8 + $0x680] sm:$0xf]  ;;  %v4091_v15 = vld [vmem:[#allocation8 + $0x46c] sm:$0xf0] }
  0x72   :  { %v3823_v16 = vld [vmem:[#allocation8 + $0x780] sm:$0xf]  ;;  %v4191_v17 = vld [vmem:[#allocation8 + $0x78c] sm:$0xf0]  ;;  %v3696_v20 = vor.u32 %v4159_v13, %v3695_v12  ;;  %v3424_v21 = vor.u32 %v4091_v15, %v3423_v11  ;;  %v4009_v11 = vld [vmem:[#allocation8 + $0x1e4] sm:$0xf] }
  0x73   :  { %2168 = vmatpush.bf16.msra.mxu0 %v2880_v14  ;;  %2181 = vmatpush.bf16.msra.mxu1 %v3008_v19  ;;  %v3568_v14 = vor.u32 %v4127_v7, %v3567_v6  ;;  %v3551_v18 = vld [vmem:[#allocation8 + $0x560] sm:$0xf]  ;;  %v4123_v19 = vld [vmem:[#allocation8 + $0x56c] sm:$0xf0]  ;;  %v3824_v22 = vor.u32 %v4191_v17, %v3823_v16  ;;  %v3105_v12 = vld [vmem:[#allocation8 + $0x1f0] sm:$0xf0] }
  0x74   :  { %v3552_v23 = vor.u32 %v4123_v19, %v3551_v18  ;;  %v3407_v24 = vld [vmem:[#allocation8 + $0x440] sm:$0xf]  ;;  %v4087_v25 = vld [vmem:[#allocation8 + $0x44c] sm:$0xf0]  ;;  %v3108_v19 = vor.u32 %v4009_v11, %v3105_v12  ;;  %v4029_v11 = vld [vmem:[#allocation8 + $0x284] sm:$0xf] }
  0x75   :  { %2194 = vmatpush.bf16.msra.mxu2 %v3136_v28  ;;  %2207 = vmatpush.bf16.msra.mxu3 %v3264_v30  ;;  %v3535_v26 = vld [vmem:[#allocation8 + $0x540] sm:$0xf]  ;;  %v4119_v27 = vld [vmem:[#allocation8 + $0x54c] sm:$0xf0]  ;;  %v3408_v28 = vor.u32 %v4087_v25, %v3407_v24  ;;  %v3089_v24 = vld [vmem:[#allocation8 + $0x1d0] sm:$0xf0] }
  0x76   :  { %v3679_v30 = vld [vmem:[#allocation8 + $0x660] sm:$0xf]  ;;  %v4155_v31 = vld [vmem:[#allocation8 + $0x66c] sm:$0xf0]  ;;  %v3185_v12 = vld [vmem:[#allocation8 + $0x290] sm:$0xf0] }
  0x77   :  { %2169 = vmatpush.bf16.msra.mxu0 %v2864_v29  ;;  %2182 = vmatpush.bf16.msra.mxu1 %v2992_v35  ;;  %v3536_v29 = vor.u32 %v4119_v27, %v3535_v26  ;;  %v3807_v32 = vld [vmem:[#allocation8 + $0x760] sm:$0xf]  ;;  %v3680_v33 = vor.u32 %v4155_v31, %v3679_v30  ;;  %v4187_v34 = vld [vmem:[#allocation8 + $0x76c] sm:$0xf0]  ;;  %v4041_v30 = vld [vmem:[#allocation8 + $0x2e4] sm:$0xf] }
  0x78   :  { %v3808_v35 = vor.u32 %v4187_v34, %v3807_v32  ;;  %v4083_v37 = vld [vmem:[#allocation8 + $0x42c] sm:$0xf0]  ;;  %v3519_v39 = vld [vmem:[#allocation8 + $0x520] sm:$0xf]  ;;  %v3233_v31 = vld [vmem:[#allocation8 + $0x2f0] sm:$0xf0] }
  0x79   :  { %2195 = vmatpush.bf16.msra.mxu2 %v3120_v45  ;;  %2208 = vmatpush.bf16.msra.mxu3 %v3248_v46  ;;  %v3663_v41 = vld [vmem:[#allocation8 + $0x640] sm:$0xf]  ;;  %v4151_v42 = vld [vmem:[#allocation8 + $0x64c] sm:$0xf0]  ;;  %v4073_v32 = vld [vmem:[#allocation8 + $0x3e4] sm:$0xf] }
  0x7a   :  { %v3791_v43 = vld [vmem:[#allocation8 + $0x740] sm:$0xf]  ;;  %v3664_v44 = vor.u32 %v4151_v42, %v3663_v41  ;;  %v4183_v45 = vld [vmem:[#allocation8 + $0x74c] sm:$0xf0]  ;;  %v3236_v42 = vor.u32 %v4041_v30, %v3233_v31  ;;  %v3953_v30 = vld [vmem:[#allocation8 + $0x24] sm:$0xf] }
  0x7b   :  { %2214 = vmatpush.bf16.msrb.mxu0 %v3488_v36  ;;  %2227 = vmatpush.bf16.msrb.mxu1 %v3616_v40  ;;  %v3391_v36 = vld [vmem:[#allocation8 + $0x420] sm:$0xf]  ;;  %v4115_v40 = vld [vmem:[#allocation8 + $0x52c] sm:$0xf0]  ;;  %v3792_v46 = vor.u32 %v4183_v45, %v3791_v43  ;;  %v2881_v31 = vld [vmem:[#allocation8 + $0x30] sm:$0xf0] }
  0x7c   :  { %v3392_v38 = vor.u32 %v4083_v37, %v3391_v36  ;;  %v3520_v50 = vor.u32 %v4115_v40, %v3519_v39  ;;  %v4111_v52 = vld [vmem:[#allocation8 + $0x50c] sm:$0xf0]  ;;  %v3775_v57 = vld [vmem:[#allocation8 + $0x720] sm:$0xf]  ;;  %v3361_v36 = vld [vmem:[#allocation8 + $0x3f0] sm:$0xf0] }
  0x7d   :  { %2240 = vmatpush.bf16.msrb.mxu2 %v3744_v47  ;;  %2253 = vmatpush.bf16.msrb.mxu3 %v3872_v49  ;;  %v3375_v47 = vld [vmem:[#allocation8 + $0x400] sm:$0xf]  ;;  %v4147_v55 = vld [vmem:[#allocation8 + $0x62c] sm:$0xf0]  ;;  %v3969_v37 = vld [vmem:[#allocation8 + $0xa4] sm:$0xf] }
  0x7e   :  { %v3503_v49 = vld [vmem:[#allocation8 + $0x500] sm:$0xf]  ;;  %v4179_v58 = vld [vmem:[#allocation8 + $0x72c] sm:$0xf0]  ;;  %v4001_v40 = vld [vmem:[#allocation8 + $0x1a4] sm:$0xf] }
  0x7f   :  { %2215 = vmatpush.bf16.msrb.mxu0 %v3472_v48  ;;  %2228 = vmatpush.bf16.msrb.mxu1 %v3600_v54  ;;  %v4079_v48 = vld [vmem:[#allocation8 + $0x40c] sm:$0xf0]  ;;  %v3504_v53 = vor.u32 %v4111_v52, %v3503_v49  ;;  %v3647_v54 = vld [vmem:[#allocation8 + $0x620] sm:$0xf]  ;;  %v3776_v59 = vor.u32 %v4179_v58, %v3775_v57  ;;  %v3345_v52 = vld [vmem:[#allocation8 + $0x3d0] sm:$0xf0] }
  0x80   :  { %v3376_v51 = vor.u32 %v4079_v48, %v3375_v47  ;;  %v3648_v56 = vor.u32 %v4147_v55, %v3647_v54  ;;  %v3759_v63 = vld [vmem:[#allocation8 + $0x700] sm:$0xf]  ;;  %v4175_v0 = vld [vmem:[#allocation8 + $0x70c] sm:$0xf0]  ;;  %v3217_v47 = vld [vmem:[#allocation8 + $0x2d0] sm:$0xf0] }
  0x81   :  { %2241 = vmatpush.bf16.msrb.mxu2 %v3728_v60  ;;  %2254 = vmatpush.bf16.msrb.mxu3 %v3856_v62  ;;  %v3631_v60 = vld [vmem:[#allocation8 + $0x600] sm:$0xf]  ;;  %v3760_v1 = vor.u32 %v4175_v0, %v3759_v63  ;;  %v4069_v48 = vld [vmem:[#allocation8 + $0x3c4] sm:$0xf]  ;;  %v2929_v54 = vld [vmem:[#allocation8 + $0x90] sm:$0xf0] }
  0x82   :  { %v3997_v55 = vld [vmem:[#allocation8 + $0x184] sm:$0xf]  ;;  %v3201_v63 = vld [vmem:[#allocation8 + $0x2b0] sm:$0xf0] }
  0x83   :  { %2216 = vmatpush.bf16.msrb.mxu0 %v3456_v61  ;;  %2229 = vmatpush.bf16.msrb.mxu1 %v3584_v2  ;;  %v4143_v61 = vld [vmem:[#allocation8 + $0x60c] sm:$0xf0]  ;;  %v4432_v2 = vld [vmem:[#allocation7] sm:$0xff]  ;;  %v4065_v0 = vld [vmem:[#allocation8 + $0x3a4] sm:$0xf] }
  0x84   :  { %v3632_v62 = vor.u32 %v4143_v61, %v3631_v60  ;;  %v160_v3 = vperm.slane %v4432_v2, 0  ;;  %v161_v4 = vperm.slane %v4432_v2, 1  ;;  %v162_v15 = vperm.slane %v4432_v2, 2 }
  0x85   :  { %2242 = vmatpush.bf16.msrb.mxu2 %v3712_v8  ;;  %2255 = vmatpush.bf16.msrb.mxu3 %v3840_v10  ;;  %v3977_v8 = vld [vmem:[#allocation8 + $0xe4] sm:$0xf]  ;;  %v163_v18 = vperm.slane %v4432_v2, 3  ;;  %v3348_v60 = vor.u32 %v4069_v48, %v3345_v52  ;;  %v2993_v52 = vld [vmem:[#allocation8 + $0x110] sm:$0xf0] }
  0x87   :  { %2217 = vmatpush.bf16.msrb.mxu0 %v3440_v9  ;;  %2230 = vmatpush.bf16.msrb.mxu1 %v3568_v14  ;;  %v2977_v9 = vld [vmem:[#allocation8 + $0xf0] sm:$0xf0] }
  0x88   :  { %v2980_v16 = vor.u32 %v3977_v8, %v2977_v9 }
  0x89   :  { %2243 = vmatpush.bf16.msrb.mxu2 %v3696_v20  ;;  %2256 = vmatpush.bf16.msrb.mxu3 %v3824_v22  ;;  %v3973_v20 = vld [vmem:[#allocation8 + $0xc4] sm:$0xf] }
  0x8b   :  { %2218 = vmatpush.bf16.msrb.mxu0 %v3424_v21  ;;  %2231 = vmatpush.bf16.msrb.mxu1 %v3552_v23  ;;  %v2961_v21 = vld [vmem:[#allocation8 + $0xd0] sm:$0xf0]  ;;  %v4005_v23 = vld [vmem:[#allocation8 + $0x1c4] sm:$0xf] }
  0x8d   :  { %2244 = vmatpush.bf16.msrb.mxu2 %v3680_v33  ;;  %2257 = vmatpush.bf16.msrb.mxu3 %v3808_v35  ;;  %v3092_v35 = vor.u32 %v4005_v23, %v3089_v24 }
  0x8f   :  { %2219 = vmatpush.bf16.msrb.mxu0 %v3408_v28  ;;  %2232 = vmatpush.bf16.msrb.mxu1 %v3536_v29  ;;  %v2964_v29 = vor.u32 %v3973_v20, %v2961_v21  ;;  %v3025_v20 = vld [vmem:[#allocation8 + $0x150] sm:$0xf0]  ;;  %v3188_v21 = vor.u32 %v4029_v11, %v3185_v12  ;;  %v4101_v12 = vld [vmem:[#allocation8 + $0x4c4] sm:$0xf] }
  0x91   :  { %2245 = vmatpush.bf16.msrb.mxu2 %v3664_v44  ;;  %2258 = vmatpush.bf16.msrb.mxu3 %v3792_v46  ;;  %v3364_v44 = vor.u32 %v4073_v32, %v3361_v36  ;;  %v4037_v46 = vld [vmem:[#allocation8 + $0x2c4] sm:$0xf]  ;;  %v164_v32 = vperm.slane %v4432_v2, 4 }
  0x92   :  { %v3220_v58 = vor.u32 %v4037_v46, %v3217_v47  ;;  %v2865_v46 = vld [vmem:[#allocation8 + $0x10] sm:$0xf0] }
  0x93   :  { %2220 = vmatpush.bf16.msrb.mxu0 %v3392_v38  ;;  %2233 = vmatpush.bf16.msrb.mxu1 %v3520_v50  ;;  %v2945_v38 = vld [vmem:[#allocation8 + $0xb0] sm:$0xf0] }
  0x94   :  { %v3073_v50 = vld [vmem:[#allocation8 + $0x1b0] sm:$0xf0]  ;;  %v2948_v45 = vor.u32 %v3969_v37, %v2945_v38  ;;  %v2884_v38 = vor.u32 %v3953_v30, %v2881_v31  ;;  %v4201_v31 = vld [vmem:[#allocation8 + $0x7e4] sm:$0xf] }
  0x95   :  { %2246 = vmatpush.bf16.msrb.mxu2 %v3648_v56  ;;  %2259 = vmatpush.bf16.msrb.mxu3 %v3776_v59  ;;  %v3057_v56 = vld [vmem:[#allocation8 + $0x190] sm:$0xf0] }
  0x96   :  { %v3745_v30 = vld [vmem:[#allocation8 + $0x6f0] sm:$0xf0] }
  0x97   :  { %2221 = vmatpush.bf16.msrb.mxu0 %v3376_v51  ;;  %2234 = vmatpush.bf16.msrb.mxu1 %v3504_v53  ;;  %v3076_v51 = vor.u32 %v4001_v40, %v3073_v50  ;;  %v3965_v53 = vld [vmem:[#allocation8 + $0x84] sm:$0xf]  ;;  %v3153_v40 = vld [vmem:[#allocation8 + $0x250] sm:$0xf0] }
  0x98   :  { %v2932_v61 = vor.u32 %v3965_v53, %v2929_v54  ;;  %v4053_v50 = vld [vmem:[#allocation8 + $0x344] sm:$0xf] }
  0x99   :  { %2247 = vmatpush.bf16.msrb.mxu2 %v3632_v62  ;;  %2260 = vmatpush.bf16.msrb.mxu3 %v3760_v1  ;;  %v4033_v62 = vld [vmem:[#allocation8 + $0x2a4] sm:$0xf]  ;;  %v3060_v1 = vor.u32 %v3997_v55, %v3057_v56  ;;  %v3489_v56 = vld [vmem:[#allocation8 + $0x4f0] sm:$0xf0] }
  0x9a   :  { %v3204_v8 = vor.u32 %v4033_v62, %v3201_v63  ;;  %v4105_v53 = vld [vmem:[#allocation8 + $0x4e4] sm:$0xf]  ;;  %v3137_v63 = vld [vmem:[#allocation8 + $0x230] sm:$0xf0] }
  0x9b   :  { %v4017_v62 = vld [vmem:[#allocation8 + $0x224] sm:$0xf] }
  0x9c   :  { %v3140_v11 = vor.u32 %v4017_v62, %v3137_v63  ;;  %v4161_v63 = vld [vmem:[#allocation8 + $0x6a4] sm:$0xf] }
  0xb7   :  { %v505_v5 = vpop.f32.mrf.mxu0  ;;  %v518_v7 = vpop.f32.mrf.mxu1 }
  0xb8   :  { %v506_v6 = vadd.f32 %v505_v5, %v160_v3  ;;  %v519_v10 = vadd.f32 %v518_v7, %v161_v4  ;;  %v3329_v3 = vld [vmem:[#allocation8 + $0x3b0] sm:$0xf0]  ;;  %v3961_v4 = vld [vmem:[#allocation8 + $0x64] sm:$0xf] }
  0xb9   :  { %v2913_v5 = vld [vmem:[#allocation8 + $0x70] sm:$0xf0]  ;;  %v3332_v9 = vor.u32 %v4065_v0, %v3329_v3 }
  0xba   :  { %v600_v13 = vmax.f32 %v506_v6, 0.0  ;;  %v601_v14 = vmax.f32 %v519_v10, 0.0  ;;  %v3993_v6 = vld [vmem:[#allocation8 + $0x164] sm:$0xf]  ;;  %v3041_v7 = vld [vmem:[#allocation8 + $0x170] sm:$0xf0]  ;;  %v2916_v10 = vor.u32 %v3961_v4, %v2913_v5 }
  0xbb   :  { %v4049_v4 = vld [vmem:[#allocation8 + $0x324] sm:$0xf]  ;;  %v3265_v5 = vld [vmem:[#allocation8 + $0x330] sm:$0xf0] }
  0xbc   :  { %v4437_v17 = vpack.c.bf16 %v600_v13, %v600_v13  ;;  %v4440_v22 = vpack.c.bf16 %v601_v14, %v601_v14  ;;  %v4061_v13 = vld [vmem:[#allocation8 + $0x384] sm:$0xf]  ;;  %v3044_v14 = vor.u32 %v3993_v6, %v3041_v7  ;;  %v167_v7 = vperm.slane %v4432_v2, 7 }
  0xbe   :  { %2170 = vmatmul.bf16.vlgmr.msra.gmra.mxu0 %v4437_v17  ;;  %2183 = vmatmul.bf16.vlgmr.msra.gmra.mxu1 %v4440_v22 }
  0xbf   :  { %v544_v27 = vpop.f32.mrf.mxu3  ;;  %2266 = vmatpush.bf16.msra.mxu0 %v2980_v16  ;;  %v507_v28 = vpop.f32.mrf.mxu0  ;;  %2279 = vmatpush.bf16.msra.mxu1 %v3108_v19  ;;  %v3957_v16 = vld [vmem:[#allocation8 + $0x44] sm:$0xf] }
  0xc0   :  { %v531_v25 = vpop.f32.mrf.mxu2  ;;  %v545_v33 = vadd.f32 %v544_v27, %v163_v18  ;;  %v520_v34 = vpop.f32.mrf.mxu1  ;;  %v2897_v18 = vld [vmem:[#allocation8 + $0x50] sm:$0xf0]  ;;  %v3989_v19 = vld [vmem:[#allocation8 + $0x144] sm:$0xf] }
  0xc1   :  { %v532_v26 = vadd.f32 %v531_v25, %v162_v15  ;;  %v3313_v15 = vld [vmem:[#allocation8 + $0x390] sm:$0xf0]  ;;  %v2900_v24 = vor.u32 %v3957_v16, %v2897_v18  ;;  %v4025_v25 = vld [vmem:[#allocation8 + $0x264] sm:$0xf]  ;;  %v3028_v28 = vor.u32 %v3989_v19, %v3025_v20  ;;  %v3268_v16 = vor.u32 %v4049_v4, %v3265_v5 }
  0xc2   :  { %v603_v41 = vmax.f32 %v545_v33, 0.0  ;;  %v3316_v23 = vor.u32 %v4061_v13, %v3313_v15  ;;  %v4057_v27 = vld [vmem:[#allocation8 + $0x364] sm:$0xf]  ;;  %v3009_v34 = vld [vmem:[#allocation8 + $0x130] sm:$0xf0] }
  0xc3   :  { %v602_v39 = vmax.f32 %v532_v26, 0.0  ;;  %2267 = vmatpush.bf16.msra.mxu0 %v2964_v29  ;;  %2280 = vmatpush.bf16.msra.mxu1 %v3092_v35  ;;  %v3169_v26 = vld [vmem:[#allocation8 + $0x270] sm:$0xf0]  ;;  %v3985_v33 = vld [vmem:[#allocation8 + $0x124] sm:$0xf]  ;;  %v165_v35 = vperm.slane %v4432_v2, 5 }
  0xc4   :  { %v4446_v49 = vpack.c.bf16 %v603_v41, %v603_v41  ;;  %v3297_v29 = vld [vmem:[#allocation8 + $0x370] sm:$0xf0]  ;;  %v3172_v36 = vor.u32 %v4025_v25, %v3169_v26  ;;  %v4013_v19 = vld [vmem:[#allocation8 + $0x204] sm:$0xf] }
  0xc5   :  { %v4444_v43 = vpack.c.bf16 %v602_v39, %v602_v39  ;;  %v3300_v37 = vor.u32 %v4057_v27, %v3297_v29  ;;  %v4021_v39 = vld [vmem:[#allocation8 + $0x244] sm:$0xf]  ;;  %v3473_v13 = vld [vmem:[#allocation8 + $0x4d0] sm:$0xf0] }
  0xc6   :  { %2209 = vmatmul.bf16.vlgmr.msra.gmra.mxu3 %v4446_v49  ;;  %v3156_v55 = vor.u32 %v4021_v39, %v3153_v40  ;;  %v3601_v18 = vld [vmem:[#allocation8 + $0x5d0] sm:$0xf0]  ;;  %v4169_v26 = vld [vmem:[#allocation8 + $0x6e4] sm:$0xf]  ;;  %v3476_v29 = vor.u32 %v4101_v12, %v3473_v13 }
  0xc7   :  { %2196 = vmatmul.bf16.vlgmr.msra.gmra.mxu2 %v4444_v43  ;;  %2305 = vmatpush.bf16.msra.mxu3 %v3364_v44  ;;  %v546_v59 = vpop.f32.mrf.mxu3  ;;  %v3281_v44 = vld [vmem:[#allocation8 + $0x350] sm:$0xf0]  ;;  %v4129_v40 = vld [vmem:[#allocation8 + $0x5a4] sm:$0xf] }
  0xc8   :  { %2292 = vmatpush.bf16.msra.mxu2 %v3236_v42  ;;  %v533_v57 = vpop.f32.mrf.mxu2  ;;  %2268 = vmatpush.bf16.msra.mxu0 %v2948_v45  ;;  %v3012_v42 = vor.u32 %v3985_v33, %v3009_v34  ;;  %v3949_v45 = vld [vmem:[#allocation8 + $0x4] sm:$0xf]  ;;  %v3121_v20 = vld [vmem:[#allocation8 + $0x210] sm:$0xf0] }
  0xc9   :  { %2281 = vmatpush.bf16.msra.mxu1 %v3076_v51  ;;  %v3981_v51 = vld [vmem:[#allocation8 + $0x104] sm:$0xf]  ;;  %v3249_v25 = vld [vmem:[#allocation8 + $0x310] sm:$0xf0] }
  0xca   :  { %v4137_v57 = vld [vmem:[#allocation8 + $0x5e4] sm:$0xf]  ;;  %v2996_v3 = vor.u32 %v3981_v51, %v2993_v52  ;;  %v3841_v4 = vld [vmem:[#allocation8 + $0x7b0] sm:$0xf0] }
  0xcb   :  { %2306 = vmatpush.bf16.msra.mxu3 %v3348_v60  ;;  %v3284_v60 = vor.u32 %v4053_v50, %v3281_v44  ;;  %v3585_v50 = vld [vmem:[#allocation8 + $0x5b0] sm:$0xf0]  ;;  %v4197_v51 = vld [vmem:[#allocation8 + $0x7c4] sm:$0xf] }
  0xcc   :  { %2293 = vmatpush.bf16.msra.mxu2 %v3220_v58  ;;  %2269 = vmatpush.bf16.msra.mxu0 %v2932_v61  ;;  %v3617_v58 = vld [vmem:[#allocation8 + $0x5f0] sm:$0xf0]  ;;  %v2868_v61 = vor.u32 %v3949_v45, %v2865_v46  ;;  %v3588_v52 = vor.u32 %v4129_v40, %v3585_v50  ;;  %v4089_v5 = vld [vmem:[#allocation8 + $0x464] sm:$0xf] }
  0xcd   :  { %2282 = vmatpush.bf16.msra.mxu1 %v3060_v1  ;;  %v166_v1 = vperm.slane %v4432_v2, 6  ;;  %v4157_v13 = vld [vmem:[#allocation8 + $0x684] sm:$0xf] }
  0xce   :  { %v4181_v40 = vld [vmem:[#allocation8 + $0x744] sm:$0xf] }
  0xcf   :  { %2307 = vmatpush.bf16.msra.mxu3 %v3332_v9 }
  0xd0   :  { %2294 = vmatpush.bf16.msra.mxu2 %v3204_v8  ;;  %2270 = vmatpush.bf16.msra.mxu0 %v2916_v10  ;;  %v3492_v8 = vor.u32 %v4105_v53, %v3489_v56  ;;  %v3620_v10 = vor.u32 %v4137_v57, %v3617_v58  ;;  %v3857_v53 = vld [vmem:[#allocation8 + $0x7d0] sm:$0xf0]  ;;  %v4125_v57 = vld [vmem:[#allocation8 + $0x584] sm:$0xf] }
  0xd1   :  { %2283 = vmatpush.bf16.msra.mxu1 %v3044_v14  ;;  %v4133_v14 = vld [vmem:[#allocation8 + $0x5c4] sm:$0xf]  ;;  %v3569_v58 = vld [vmem:[#allocation8 + $0x590] sm:$0xf0] }
  0xd2   :  { %v3604_v34 = vor.u32 %v4133_v14, %v3601_v18  ;;  %v3697_v14 = vld [vmem:[#allocation8 + $0x690] sm:$0xf0]  ;;  %v4189_v18 = vld [vmem:[#allocation8 + $0x784] sm:$0xf] }
  0xd3   :  { %2308 = vmatpush.bf16.msra.mxu3 %v3316_v23 }
  0xd4   :  { %2295 = vmatpush.bf16.msra.mxu2 %v3188_v21  ;;  %2271 = vmatpush.bf16.msra.mxu0 %v2900_v24  ;;  %v4045_v24 = vld [vmem:[#allocation8 + $0x304] sm:$0xf] }
  0xd5   :  { %2284 = vmatpush.bf16.msra.mxu1 %v3028_v28  ;;  %v3252_v39 = vor.u32 %v4045_v24, %v3249_v25  ;;  %v3700_v24 = vor.u32 %v4157_v13, %v3697_v14  ;;  %v4173_v13 = vld [vmem:[#allocation8 + $0x704] sm:$0xf]  ;;  %v3761_v14 = vld [vmem:[#allocation8 + $0x710] sm:$0xf0] }
  0xd7   :  { %v557_v41 = vpop.f32.mrf.mxu0  ;;  %v570_v48 = vpop.f32.mrf.mxu1  ;;  %2309 = vmatpush.bf16.msra.mxu3 %v3300_v37  ;;  %v3457_v37 = vld [vmem:[#allocation8 + $0x4b0] sm:$0xf0] }
  0xd8   :  { %v558_v47 = vadd.f32 %v557_v41, %v164_v32  ;;  %v571_v54 = vadd.f32 %v570_v48, %v165_v35  ;;  %2296 = vmatpush.bf16.msra.mxu2 %v3172_v36  ;;  %2272 = vmatpush.bf16.msra.mxu0 %v2884_v38  ;;  %v3873_v32 = vld [vmem:[#allocation8 + $0x7f0] sm:$0xf0]  ;;  %v3124_v35 = vor.u32 %v4013_v19, %v3121_v20  ;;  %v4097_v36 = vld [vmem:[#allocation8 + $0x4a4] sm:$0xf] }
  0xd9   :  { %2285 = vmatpush.bf16.msra.mxu1 %v3012_v42  ;;  %v3748_v42 = vor.u32 %v4169_v26, %v3745_v30  ;;  %v3876_v45 = vor.u32 %v4201_v31, %v3873_v32  ;;  %v3460_v46 = vor.u32 %v4097_v36, %v3457_v37  ;;  %v3729_v48 = vld [vmem:[#allocation8 + $0x6d0] sm:$0xf0]  ;;  %v4085_v20 = vld [vmem:[#allocation8 + $0x444] sm:$0xf] }
  0xda   :  { %v604_v59 = vmax.f32 %v558_v47, 0.0  ;;  %v605_v0 = vmax.f32 %v571_v54, 0.0  ;;  %v4165_v47 = vld [vmem:[#allocation8 + $0x6c4] sm:$0xf]  ;;  %v3825_v19 = vld [vmem:[#allocation8 + $0x790] sm:$0xf0] }
  0xdb   :  { %2310 = vmatpush.bf16.msra.mxu3 %v3284_v60  ;;  %v4093_v54 = vld [vmem:[#allocation8 + $0x484] sm:$0xf]  ;;  %v3732_v60 = vor.u32 %v4165_v47, %v3729_v48  ;;  %v3828_v25 = vor.u32 %v4189_v18, %v3825_v19  ;;  %v3809_v31 = vld [vmem:[#allocation8 + $0x770] sm:$0xf0] }
  0xdc   :  { %v4453_v6 = vpack.c.bf16 %v604_v59, %v604_v59  ;;  %v4456_v9 = vpack.c.bf16 %v605_v0, %v605_v0  ;;  %2297 = vmatpush.bf16.msra.mxu2 %v3156_v55  ;;  %2273 = vmatpush.bf16.msra.mxu0 %v2868_v61  ;;  %v3441_v55 = vld [vmem:[#allocation8 + $0x490] sm:$0xf0]  ;;  %v3860_v61 = vor.u32 %v4197_v51, %v3857_v53  ;;  %v4153_v26 = vld [vmem:[#allocation8 + $0x664] sm:$0xf] }
  0xdd   :  { %2286 = vmatpush.bf16.msra.mxu1 %v2996_v3  ;;  %v3444_v62 = vor.u32 %v4093_v54, %v3441_v55  ;;  %v3713_v0 = vld [vmem:[#allocation8 + $0x6b0] sm:$0xf0]  ;;  %v4193_v3 = vld [vmem:[#allocation8 + $0x7a4] sm:$0xf]  ;;  %v3980_v54 = vld [vmem:[#allocation8 + $0xf4] sm:$0xf0] }
  0xde   :  { %2222 = vmatmul.bf16.vlgmr.msrb.gmra.mxu0 %v4453_v6  ;;  %2235 = vmatmul.bf16.vlgmr.msrb.gmra.mxu1 %v4456_v9  ;;  %v3844_v12 = vor.u32 %v4193_v3, %v3841_v4  ;;  %v4185_v30 = vld [vmem:[#allocation8 + $0x764] sm:$0xf]  ;;  %v3377_v47 = vld [vmem:[#allocation8 + $0x410] sm:$0xf0]  ;;  %v3111_v55 = vld [vmem:[#allocation8 + $0x1e8] sm:$0xf] }
  0xdf   :  { %v583_v15 = vpop.f32.mrf.mxu2  ;;  %v596_v23 = vpop.f32.mrf.mxu3  ;;  %2311 = vmatpush.bf16.msra.mxu3 %v3268_v16  ;;  %v4081_v32 = vld [vmem:[#allocation8 + $0x424] sm:$0xf]  ;;  %v3812_v37 = vor.u32 %v4185_v30, %v3809_v31  ;;  %v3505_v51 = vld [vmem:[#allocation8 + $0x510] sm:$0xf0]  ;;  %v2967_v3 = vld [vmem:[#allocation8 + $0xc8] sm:$0xf] }
  0xe0   :  { %v584_v21 = vadd.f32 %v583_v15, %v166_v1  ;;  %v559_v2 = vpop.f32.mrf.mxu0  ;;  %v597_v27 = vadd.f32 %v596_v23, %v167_v7  ;;  %2318 = vmatpush.bf16.msrb.mxu0 %v3492_v8  ;;  %v572_v28 = vpop.f32.mrf.mxu1  ;;  %2298 = vmatpush.bf16.msra.mxu2 %v3140_v11  ;;  %v3572_v1 = vor.u32 %v4125_v57, %v3569_v58  ;;  %v3425_v7 = vld [vmem:[#allocation8 + $0x470] sm:$0xf0]  ;;  %v4121_v8 = vld [vmem:[#allocation8 + $0x564] sm:$0xf]  ;;  %v3223_v30 = vld [vmem:[#allocation8 + $0x2c8] sm:$0xf] }
  0xe1   :  { %2331 = vmatpush.bf16.msrb.mxu1 %v3620_v10  ;;  %v3553_v10 = vld [vmem:[#allocation8 + $0x570] sm:$0xf0]  ;;  %v3716_v11 = vor.u32 %v4161_v63, %v3713_v0  ;;  %v3428_v15 = vor.u32 %v4089_v5, %v3425_v7  ;;  %v4117_v23 = vld [vmem:[#allocation8 + $0x544] sm:$0xf]  ;;  %v3976_v5 = vld [vmem:[#allocation8 + $0xd4] sm:$0xf0] }
  0xe2   :  { %v606_v33 = vmax.f32 %v584_v21, 0.0  ;;  %v607_v38 = vmax.f32 %v597_v27, 0.0  ;;  %v3556_v16 = vor.u32 %v4121_v8, %v3553_v10  ;;  %v3409_v21 = vld [vmem:[#allocation8 + $0x450] sm:$0xf0]  ;;  %v4109_v48 = vld [vmem:[#allocation8 + $0x504] sm:$0xf]  ;;  %v2968_v18 = vor.u32 %v3976_v5, %v2967_v3 }
  0xe3   :  { %2312 = vmatpush.bf16.msra.mxu3 %v3252_v39  ;;  %v3537_v2 = vld [vmem:[#allocation8 + $0x550] sm:$0xf0]  ;;  %v3412_v28 = vor.u32 %v4085_v20, %v3409_v21  ;;  %v4145_v58 = vld [vmem:[#allocation8 + $0x624] sm:$0xf]  ;;  %v3095_v7 = vld [vmem:[#allocation8 + $0x1c8] sm:$0xf] }
  0xe4   :  { %v4460_v41 = vpack.c.bf16 %v606_v33, %v606_v33  ;;  %v4462_v44 = vpack.c.bf16 %v607_v38, %v607_v38  ;;  %2319 = vmatpush.bf16.msrb.mxu0 %v3476_v29  ;;  %2299 = vmatpush.bf16.msra.mxu2 %v3124_v35  ;;  %v3681_v27 = vld [vmem:[#allocation8 + $0x670] sm:$0xf0]  ;;  %v3540_v29 = vor.u32 %v4117_v23, %v3537_v2  ;;  %v4149_v38 = vld [vmem:[#allocation8 + $0x644] sm:$0xf]  ;;  %v4008_v8 = vld [vmem:[#allocation8 + $0x1d4] sm:$0xf0] }
  0xe5   :  { %2332 = vmatpush.bf16.msrb.mxu1 %v3604_v34  ;;  %v3393_v33 = vld [vmem:[#allocation8 + $0x430] sm:$0xf0]  ;;  %v4113_v34 = vld [vmem:[#allocation8 + $0x524] sm:$0xf]  ;;  %v3684_v36 = vor.u32 %v4153_v26, %v3681_v27  ;;  %v3096_v19 = vor.u32 %v4008_v8, %v3095_v7  ;;  %v3367_v20 = vld [vmem:[#allocation8 + $0x3e8] sm:$0xf]  ;;  %v3764_v27 = vor.u32 %v4173_v13, %v3761_v14 }
  0xe6   :  { %2248 = vmatmul.bf16.vlgmr.msrb.gmra.mxu2 %v4460_v41  ;;  %2261 = vmatmul.bf16.vlgmr.msrb.gmra.mxu3 %v4462_v44  ;;  %v3521_v35 = vld [vmem:[#allocation8 + $0x530] sm:$0xf0]  ;;  %v3396_v50 = vor.u32 %v4081_v32, %v3393_v33  ;;  %v4076_v21 = vld [vmem:[#allocation8 + $0x3f4] sm:$0xf0]  ;;  %v2951_v23 = vld [vmem:[#allocation8 + $0xa8] sm:$0xf] }
  0xe7   :  { %v585_v56 = vpop.f32.mrf.mxu2  ;;  %v598_v59 = vpop.f32.mrf.mxu3  ;;  %2357 = vmatpush.bf16.msrb.mxu3 %v3876_v45  ;;  %v3665_v39 = vld [vmem:[#allocation8 + $0x650] sm:$0xf0]  ;;  %v4004_v26 = vld [vmem:[#allocation8 + $0x1b4] sm:$0xf0]  ;;  %v3031_v3 = vld [vmem:[#allocation8 + $0x148] sm:$0xf] }
  0xe8   :  { %2344 = vmatpush.bf16.msrb.mxu2 %v3748_v42  ;;  %2320 = vmatpush.bf16.msrb.mxu0 %v3460_v46  ;;  %v3524_v42 = vor.u32 %v4113_v34, %v3521_v35  ;;  %v3793_v45 = vld [vmem:[#allocation8 + $0x750] sm:$0xf0]  ;;  %v4077_v46 = vld [vmem:[#allocation8 + $0x404] sm:$0xf]  ;;  %v3668_v53 = vor.u32 %v4149_v38, %v3665_v39  ;;  %v4012_v56 = vld [vmem:[#allocation8 + $0x1f4] sm:$0xf0] }
  0xe9   :  { %2333 = vmatpush.bf16.msrb.mxu1 %v3588_v52  ;;  %v2983_v52 = vld [vmem:[#allocation8 + $0xe8] sm:$0xf]  ;;  %v3796_v57 = vor.u32 %v4181_v40, %v3793_v45  ;;  %v3649_v59 = vld [vmem:[#allocation8 + $0x630] sm:$0xf0]  ;;  %v4040_v31 = vld [vmem:[#allocation8 + $0x2d4] sm:$0xf0] }
  0xea   :  { %v3777_v63 = vld [vmem:[#allocation8 + $0x730] sm:$0xf0]  ;;  %v2984_v0 = vor.u32 %v3980_v54, %v2983_v52  ;;  %v3652_v4 = vor.u32 %v4145_v58, %v3649_v59  ;;  %v3351_v34 = vld [vmem:[#allocation8 + $0x3c8] sm:$0xf]  ;;  %v4072_v35 = vld [vmem:[#allocation8 + $0x3d4] sm:$0xf0]  ;;  %v3224_v40 = vor.u32 %v4040_v31, %v3223_v30 }
  0xeb   :  { %2358 = vmatpush.bf16.msrb.mxu3 %v3860_v61  ;;  %v3508_v61 = vor.u32 %v4109_v48, %v3505_v51  ;;  %v3063_v38 = vld [vmem:[#allocation8 + $0x188] sm:$0xf]  ;;  %v4000_v39 = vld [vmem:[#allocation8 + $0x194] sm:$0xf0] }
  0xec   :  { %2345 = vmatpush.bf16.msrb.mxu2 %v3732_v60  ;;  %2321 = vmatpush.bf16.msrb.mxu0 %v3444_v62  ;;  %v3380_v60 = vor.u32 %v4077_v46, %v3377_v47  ;;  %v4177_v62 = vld [vmem:[#allocation8 + $0x724] sm:$0xf]  ;;  %v4036_v45 = vld [vmem:[#allocation8 + $0x2b4] sm:$0xf0]  ;;  %v3064_v47 = vor.u32 %v4000_v39, %v3063_v38  ;;  %v3335_v48 = vld [vmem:[#allocation8 + $0x3a8] sm:$0xf] }
  0xed   :  { %2334 = vmatpush.bf16.msrb.mxu1 %v3572_v1  ;;  %v3112_v1 = vor.u32 %v4012_v56, %v3111_v55  ;;  %v3780_v10 = vor.u32 %v4177_v62, %v3777_v63  ;;  %v4068_v51 = vld [vmem:[#allocation8 + $0x3b4] sm:$0xf0]  ;;  %v2919_v52 = vld [vmem:[#allocation8 + $0x68] sm:$0xf] }
  0xee   :  { %2274 = vmatmul.bf16.vlgmr.msra.gmra.mxu0 %v4437_v17  ;;  %2287 = vmatmul.bf16.vlgmr.msra.gmra.mxu1 %v4440_v22  ;;  %v3047_v54 = vld [vmem:[#allocation8 + $0x168] sm:$0xf]  ;;  %v3996_v55 = vld [vmem:[#allocation8 + $0x174] sm:$0xf0] }
  0xef   :  { %2359 = vmatpush.bf16.msrb.mxu3 %v3844_v12  ;;  %v3633_v12 = vld [vmem:[#allocation8 + $0x610] sm:$0xf0]  ;;  %v3191_v58 = vld [vmem:[#allocation8 + $0x288] sm:$0xf]  ;;  %v4032_v59 = vld [vmem:[#allocation8 + $0x294] sm:$0xf0] }
  0xf0   :  { %2346 = vmatpush.bf16.msrb.mxu2 %v3716_v11  ;;  %2322 = vmatpush.bf16.msrb.mxu0 %v3428_v15  ;;  %v4141_v11 = vld [vmem:[#allocation8 + $0x604] sm:$0xf]  ;;  %v3239_v15 = vld [vmem:[#allocation8 + $0x2e8] sm:$0xf]  ;;  %v4064_v63 = vld [vmem:[#allocation8 + $0x394] sm:$0xf0]  ;;  %v3192_v5 = vor.u32 %v4032_v59, %v3191_v58 }
  0xf1   :  { %2335 = vmatpush.bf16.msrb.mxu1 %v3556_v16  ;;  %v4044_v16 = vld [vmem:[#allocation8 + $0x2f4] sm:$0xf0]  ;;  %v3636_v2 = vor.u32 %v4141_v11, %v3633_v12  ;;  %v3319_v62 = vld [vmem:[#allocation8 + $0x388] sm:$0xf] }
  0xf2   :  { %v3320_v7 = vor.u32 %v4064_v63, %v3319_v62  ;;  %v3175_v8 = vld [vmem:[#allocation8 + $0x268] sm:$0xf]  ;;  %v4060_v14 = vld [vmem:[#allocation8 + $0x374] sm:$0xf0] }
  0xf3   :  { %2360 = vmatpush.bf16.msrb.mxu3 %v3828_v25  ;;  %v3079_v25 = vld [vmem:[#allocation8 + $0x1a8] sm:$0xf]  ;;  %v3984_v31 = vld [vmem:[#allocation8 + $0x114] sm:$0xf0] }
  0xf4   :  { %2347 = vmatpush.bf16.msrb.mxu2 %v3700_v24  ;;  %2323 = vmatpush.bf16.msrb.mxu0 %v3412_v28  ;;  %v3972_v24 = vld [vmem:[#allocation8 + $0xb4] sm:$0xf0]  ;;  %v3240_v28 = vor.u32 %v4044_v16, %v3239_v15  ;;  %v3080_v33 = vor.u32 %v4004_v26, %v3079_v25  ;;  %v3303_v13 = vld [vmem:[#allocation8 + $0x368] sm:$0xf] }
  0xf5   :  { %2336 = vmatpush.bf16.msrb.mxu1 %v3540_v29  ;;  %v3368_v29 = vor.u32 %v4076_v21, %v3367_v20  ;;  %v2952_v32 = vor.u32 %v3972_v24, %v2951_v23  ;;  %v2887_v15 = vld [vmem:[#allocation8 + $0x28] sm:$0xf]  ;;  %v3956_v16 = vld [vmem:[#allocation8 + $0x34] sm:$0xf0]  ;;  %v3304_v21 = vor.u32 %v4060_v14, %v3303_v13 }
  0xf6   :  { %2300 = vmatmul.bf16.vlgmr.msra.gmra.mxu2 %v4444_v43  ;;  %2313 = vmatmul.bf16.vlgmr.msra.gmra.mxu3 %v4446_v49  ;;  %v3159_v23 = vld [vmem:[#allocation8 + $0x248] sm:$0xf]  ;;  %v2888_v25 = vor.u32 %v3956_v16, %v2887_v15  ;;  %v4020_v39 = vld [vmem:[#allocation8 + $0x234] sm:$0xf0] }
  0xf7   :  { %2361 = vmatpush.bf16.msrb.mxu3 %v3812_v37  ;;  %v3968_v37 = vld [vmem:[#allocation8 + $0x94] sm:$0xf0]  ;;  %v3287_v24 = vld [vmem:[#allocation8 + $0x348] sm:$0xf] }
  0xf8   :  { %2348 = vmatpush.bf16.msrb.mxu2 %v3684_v36  ;;  %2324 = vmatpush.bf16.msrb.mxu0 %v3396_v50  ;;  %v2935_v36 = vld [vmem:[#allocation8 + $0x88] sm:$0xf]  ;;  %v3352_v50 = vor.u32 %v4072_v35, %v3351_v34  ;;  %v4108_v34 = vld [vmem:[#allocation8 + $0x4f4] sm:$0xf0] }
  0xf9   :  { %2337 = vmatpush.bf16.msrb.mxu1 %v3524_v42  ;;  %v3207_v42 = vld [vmem:[#allocation8 + $0x2a8] sm:$0xf]  ;;  %v2936_v46 = vor.u32 %v3968_v37, %v2935_v36  ;;  %v4140_v36 = vld [vmem:[#allocation8 + $0x5f4] sm:$0xf0] }
  0xfa   :  { %v3208_v56 = vor.u32 %v4036_v45, %v3207_v42  ;;  %v2999_v30 = vld [vmem:[#allocation8 + $0x108] sm:$0xf]  ;;  %v4052_v45 = vld [vmem:[#allocation8 + $0x334] sm:$0xf0] }
  0xfb   :  { %2362 = vmatpush.bf16.msrb.mxu3 %v3796_v57  ;;  %v3336_v57 = vor.u32 %v4068_v51, %v3335_v48  ;;  %v3623_v35 = vld [vmem:[#allocation8 + $0x5e8] sm:$0xf]  ;;  %v4048_v59 = vld [vmem:[#allocation8 + $0x314] sm:$0xf0] }
  0xfc   :  { %2349 = vmatpush.bf16.msrb.mxu2 %v3668_v53  ;;  %2325 = vmatpush.bf16.msrb.mxu0 %v3380_v60  ;;  %v3964_v53 = vld [vmem:[#allocation8 + $0x74] sm:$0xf0]  ;;  %v3143_v38 = vld [vmem:[#allocation8 + $0x228] sm:$0xf] }
  0xfd   :  { %2338 = vmatpush.bf16.msrb.mxu1 %v3508_v61  ;;  %v2920_v60 = vor.u32 %v3964_v53, %v2919_v52  ;;  %v3048_v61 = vor.u32 %v3996_v55, %v3047_v54  ;;  %v3271_v42 = vld [vmem:[#allocation8 + $0x328] sm:$0xf]  ;;  %v3144_v51 = vor.u32 %v4020_v39, %v3143_v38  ;;  %v4104_v52 = vld [vmem:[#allocation8 + $0x4d4] sm:$0xf0] }
  0xfe   :  { %v3479_v48 = vld [vmem:[#allocation8 + $0x4c8] sm:$0xf]  ;;  %v4136_v54 = vld [vmem:[#allocation8 + $0x5d4] sm:$0xf0]  ;;  %v3272_v55 = vor.u32 %v4052_v45, %v3271_v42 }
  0xff   :  { %2363 = vmatpush.bf16.msrb.mxu3 %v3780_v10  ;;  %2326 = vmatmul.bf16.vlgmr.msrb.gmra.mxu0 %v4453_v6  ;;  %v4028_v10 = vld [vmem:[#allocation8 + $0x274] sm:$0xf0]  ;;  %v3607_v53 = vld [vmem:[#allocation8 + $0x5c8] sm:$0xf]  ;;  %v3480_v62 = vor.u32 %v4104_v52, %v3479_v48 }
 0x100   :  { %2370 = vmatpush.bf16.msra.mxu0 %v2984_v0  ;;  %2350 = vmatpush.bf16.msrb.mxu2 %v3652_v4  ;;  %v2903_v0 = vld [vmem:[#allocation8 + $0x48] sm:$0xf]  ;;  %v3992_v4 = vld [vmem:[#allocation8 + $0x154] sm:$0xf0]  ;;  %v3176_v20 = vor.u32 %v4028_v10, %v3175_v8  ;;  %v3608_v63 = vor.u32 %v4136_v54, %v3607_v53 }
 0x101   :  { %2383 = vmatpush.bf16.msra.mxu1 %v3112_v1  ;;  %v3960_v1 = vld [vmem:[#allocation8 + $0x54] sm:$0xf0]  ;;  %v3032_v12 = vor.u32 %v3992_v4, %v3031_v3  ;;  %v3255_v58 = vld [vmem:[#allocation8 + $0x308] sm:$0xf] }
 0x102   :  { %2339 = vmatmul.bf16.vlgmr.msrb.gmra.mxu1 %v4456_v9  ;;  %v2904_v11 = vor.u32 %v3960_v1, %v2903_v0  ;;  %v3879_v0 = vld [vmem:[#allocation8 + $0x7e8] sm:$0xf]  ;;  %v4204_v1 = vld [vmem:[#allocation8 + $0x7f4] sm:$0xf0] }
 0x103   :  { %2364 = vmatpush.bf16.msrb.mxu3 %v3764_v27  ;;  %v4056_v27 = vld [vmem:[#allocation8 + $0x354] sm:$0xf0]  ;;  %v3463_v4 = vld [vmem:[#allocation8 + $0x4a8] sm:$0xf] }
 0x104   :  { %2371 = vmatpush.bf16.msra.mxu0 %v2968_v18  ;;  %2351 = vmatpush.bf16.msrb.mxu2 %v3636_v2  ;;  %v3015_v18 = vld [vmem:[#allocation8 + $0x128] sm:$0xf]  ;;  %v4024_v2 = vld [vmem:[#allocation8 + $0x254] sm:$0xf0]  ;;  %v3288_v37 = vor.u32 %v4056_v27, %v3287_v24 }
 0x105   :  { %2384 = vmatpush.bf16.msra.mxu1 %v3096_v19  ;;  %v3988_v19 = vld [vmem:[#allocation8 + $0x134] sm:$0xf0]  ;;  %v3591_v10 = vld [vmem:[#allocation8 + $0x5a8] sm:$0xf] }
 0x106   :  { %2365 = vmatmul.bf16.vlgmr.msrb.gmra.mxu3 %v4462_v44  ;;  %v3016_v26 = vor.u32 %v3988_v19, %v3015_v18  ;;  %v3735_v13 = vld [vmem:[#allocation8 + $0x6c8] sm:$0xf]  ;;  %v4168_v14 = vld [vmem:[#allocation8 + $0x6d4] sm:$0xf0] }
 0x107   :  { %2409 = vmatpush.bf16.msra.mxu3 %v3368_v29  ;;  %2352 = vmatmul.bf16.vlgmr.msrb.gmra.mxu2 %v4460_v41  ;;  %v3952_v29 = vld [vmem:[#allocation8 + $0x14] sm:$0xf0]  ;;  %v3863_v16 = vld [vmem:[#allocation8 + $0x7c8] sm:$0xf] }
 0x108   :  { %2396 = vmatpush.bf16.msra.mxu2 %v3240_v28  ;;  %2372 = vmatpush.bf16.msra.mxu0 %v2952_v32  ;;  %v2871_v28 = vld [vmem:[#allocation8 + $0x8] sm:$0xf]  ;;  %v4200_v18 = vld [vmem:[#allocation8 + $0x7d4] sm:$0xf0] }
 0x109   :  { %2385 = vmatpush.bf16.msra.mxu1 %v3080_v33  ;;  %v3495_v32 = vld [vmem:[#allocation8 + $0x4e8] sm:$0xf]  ;;  %v3160_v33 = vor.u32 %v4024_v2, %v3159_v23  ;;  %v3736_v23 = vor.u32 %v4168_v14, %v3735_v13  ;;  %v4128_v24 = vld [vmem:[#allocation8 + $0x594] sm:$0xf0] }
 0x10a   :  { %v3575_v2 = vld [vmem:[#allocation8 + $0x588] sm:$0xf]  ;;  %v4164_v27 = vld [vmem:[#allocation8 + $0x6b4] sm:$0xf0] }
 0x10b   :  { %2410 = vmatpush.bf16.msra.mxu3 %v3352_v50  ;;  %v3000_v50 = vor.u32 %v3984_v31, %v2999_v30  ;;  %v4196_v30 = vld [vmem:[#allocation8 + $0x7b4] sm:$0xf0]  ;;  %v3576_v31 = vor.u32 %v4128_v24, %v3575_v2  ;;  %v3703_v38 = vld [vmem:[#allocation8 + $0x688] sm:$0xf] }
 0x10c   :  { %2397 = vmatpush.bf16.msra.mxu2 %v3224_v40  ;;  %2373 = vmatpush.bf16.msra.mxu0 %v2936_v46  ;;  %v2872_v40 = vor.u32 %v3952_v29, %v2871_v28  ;;  %v3496_v46 = vor.u32 %v4108_v34, %v3495_v32  ;;  %v3847_v29 = vld [vmem:[#allocation8 + $0x7a8] sm:$0xf]  ;;  %v4160_v39 = vld [vmem:[#allocation8 + $0x694] sm:$0xf0] }
 0x10d   :  { %2386 = vmatpush.bf16.msra.mxu1 %v3064_v47  ;;  %v3624_v47 = vor.u32 %v4140_v36, %v3623_v35  ;;  %v3431_v32 = vld [vmem:[#allocation8 + $0x468] sm:$0xf]  ;;  %v4124_v36 = vld [vmem:[#allocation8 + $0x574] sm:$0xf0]  ;;  %v3704_v48 = vor.u32 %v4160_v39, %v3703_v38 }
 0x10e   :  { %v3559_v35 = vld [vmem:[#allocation8 + $0x568] sm:$0xf]  ;;  %v4192_v42 = vld [vmem:[#allocation8 + $0x794] sm:$0xf0] }
 0x10f   :  { %2411 = vmatpush.bf16.msra.mxu3 %v3336_v57  ;;  %v4016_v57 = vld [vmem:[#allocation8 + $0x214] sm:$0xf0]  ;;  %v3560_v45 = vor.u32 %v4124_v36, %v3559_v35  ;;  %v3687_v54 = vld [vmem:[#allocation8 + $0x668] sm:$0xf] }
 0x110   :  { %2398 = vmatpush.bf16.msra.mxu2 %v3208_v56  ;;  %2374 = vmatpush.bf16.msra.mxu0 %v2920_v60  ;;  %v3127_v56 = vld [vmem:[#allocation8 + $0x208] sm:$0xf]  ;;  %v4120_v52 = vld [vmem:[#allocation8 + $0x554] sm:$0xf0] }
 0x111   :  { %2387 = vmatpush.bf16.msra.mxu1 %v3048_v61  ;;  %v3751_v60 = vld [vmem:[#allocation8 + $0x6e8] sm:$0xf]  ;;  %v4172_v61 = vld [vmem:[#allocation8 + $0x6f4] sm:$0xf0]  ;;  %v3128_v3 = vor.u32 %v4016_v57, %v3127_v56 }
 0x112   :  { %v3752_v8 = vor.u32 %v4172_v61, %v3751_v60  ;;  %v3815_v57 = vld [vmem:[#allocation8 + $0x768] sm:$0xf]  ;;  %v4084_v61 = vld [vmem:[#allocation8 + $0x434] sm:$0xf0] }
 0x113   :  { %2412 = vmatpush.bf16.msra.mxu3 %v3320_v7  ;;  %v3256_v7 = vor.u32 %v4048_v59, %v3255_v58  ;;  %v4188_v58 = vld [vmem:[#allocation8 + $0x774] sm:$0xf0]  ;;  %v3399_v60 = vld [vmem:[#allocation8 + $0x428] sm:$0xf] }
 0x114   :  { %2399 = vmatpush.bf16.msra.mxu2 %v3192_v5  ;;  %2375 = vmatpush.bf16.msra.mxu0 %v2904_v11  ;;  %v4100_v5 = vld [vmem:[#allocation8 + $0x4b4] sm:$0xf0]  ;;  %v3511_v13 = vld [vmem:[#allocation8 + $0x508] sm:$0xf] }
 0x115   :  { %2388 = vmatpush.bf16.msra.mxu1 %v3032_v12  ;;  %v4132_v11 = vld [vmem:[#allocation8 + $0x5b4] sm:$0xf0]  ;;  %v3880_v12 = vor.u32 %v4204_v1, %v3879_v0  ;;  %v3464_v15 = vor.u32 %v4100_v5, %v3463_v4  ;;  %v3816_v1 = vor.u32 %v4188_v58, %v3815_v57  ;;  %v3400_v5 = vor.u32 %v4084_v61, %v3399_v60  ;;  %v3639_v36 = vld [vmem:[#allocation8 + $0x608] sm:$0xf]  ;;  %v3081_v57 = vld [vmem:[#allocation8 + $0x1b8] sm:$0xf0] }
 0x116   :  { %v3592_v19 = vor.u32 %v4132_v11, %v3591_v10  ;;  %v4116_v0 = vld [vmem:[#allocation8 + $0x534] sm:$0xf0]  ;;  %v3383_v10 = vld [vmem:[#allocation8 + $0x408] sm:$0xf]  ;;  %v4038_v60 = vld [vmem:[#allocation8 + $0x2cc] sm:$0xf] }
 0x117   :  { %2413 = vmatpush.bf16.msra.mxu3 %v3304_v21  ;;  %v4096_v21 = vld [vmem:[#allocation8 + $0x494] sm:$0xf0]  ;;  %v3767_v38 = vld [vmem:[#allocation8 + $0x708] sm:$0xf]  ;;  %v3225_v61 = vld [vmem:[#allocation8 + $0x2d8] sm:$0xf0] }
 0x118   :  { %2400 = vmatpush.bf16.msra.mxu2 %v3176_v20  ;;  %2376 = vmatpush.bf16.msra.mxu0 %v2888_v25  ;;  %v3447_v20 = vld [vmem:[#allocation8 + $0x488] sm:$0xf]  ;;  %v3864_v25 = vor.u32 %v4200_v18, %v3863_v16  ;;  %v4152_v4 = vld [vmem:[#allocation8 + $0x654] sm:$0xf0]  ;;  %v3978_v16 = vld [vmem:[#allocation8 + $0xec] sm:$0xf] }
 0x119   :  { %2389 = vmatpush.bf16.msra.mxu1 %v3016_v26  ;;  %v3719_v26 = vld [vmem:[#allocation8 + $0x6a8] sm:$0xf]  ;;  %v3448_v28 = vor.u32 %v4096_v21, %v3447_v20  ;;  %v4112_v14 = vld [vmem:[#allocation8 + $0x514] sm:$0xf0]  ;;  %v2985_v18 = vld [vmem:[#allocation8 + $0xf8] sm:$0xf0] }
 0x11a   :  { %v3720_v34 = vor.u32 %v4164_v27, %v3719_v26  ;;  %v3113_v21 = vld [vmem:[#allocation8 + $0x1f8] sm:$0xf0]  ;;  %v4148_v2 = vld [vmem:[#allocation8 + $0x634] sm:$0xf0]  ;;  %v3512_v27 = vor.u32 %v4112_v14, %v3511_v13  ;;  %v4034_v14 = vld [vmem:[#allocation8 + $0x2ac] sm:$0xf] }
 0x11b   :  { %2414 = vmatpush.bf16.msra.mxu3 %v3288_v37  ;;  %v3848_v37 = vor.u32 %v4196_v30, %v3847_v29  ;;  %v4180_v26 = vld [vmem:[#allocation8 + $0x734] sm:$0xf0]  ;;  %v3974_v29 = vld [vmem:[#allocation8 + $0xcc] sm:$0xf] }
 0x11c   :  { %2401 = vmatpush.bf16.msra.mxu2 %v3160_v33  ;;  %2377 = vmatpush.bf16.msra.mxu0 %v2872_v40  ;;  %v4092_v33 = vld [vmem:[#allocation8 + $0x474] sm:$0xf0] }
 0x11d   :  { %2390 = vmatpush.bf16.msra.mxu1 %v3000_v50  ;;  %v3432_v40 = vor.u32 %v4092_v33, %v3431_v32  ;;  %v3831_v50 = vld [vmem:[#allocation8 + $0x788] sm:$0xf]  ;;  %v2969_v32 = vld [vmem:[#allocation8 + $0xd8] sm:$0xf0]  ;;  %v4006_v33 = vld [vmem:[#allocation8 + $0x1cc] sm:$0xf] }
 0x11e   :  { %v3832_v53 = vor.u32 %v4192_v42, %v3831_v50  ;;  %v4176_v39 = vld [vmem:[#allocation8 + $0x714] sm:$0xf0]  ;;  %v3241_v50 = vld [vmem:[#allocation8 + $0x2f8] sm:$0xf0]  ;;  %v2972_v42 = vor.u32 %v3974_v29, %v2969_v32 }
 0x11f   :  { %2415 = vmatpush.bf16.msra.mxu3 %v3272_v55  ;;  %2378 = vmatmul.bf16.vlgmr.msra.gmra.mxu0 %v4437_v17  ;;  %v4156_v55 = vld [vmem:[#allocation8 + $0x674] sm:$0xf0]  ;;  %v3193_v29 = vld [vmem:[#allocation8 + $0x298] sm:$0xf0] }
 0x120   :  { %2422 = vmatpush.bf16.msrb.mxu0 %v3496_v46  ;;  %2402 = vmatpush.bf16.msra.mxu2 %v3144_v51  ;;  %v3415_v46 = vld [vmem:[#allocation8 + $0x448] sm:$0xf]  ;;  %v3321_v32 = vld [vmem:[#allocation8 + $0x398] sm:$0xf0] }
 0x121   :  { %2435 = vmatpush.bf16.msrb.mxu1 %v3624_v47  ;;  %v4088_v47 = vld [vmem:[#allocation8 + $0x454] sm:$0xf0]  ;;  %v3543_v51 = vld [vmem:[#allocation8 + $0x548] sm:$0xf] }
 0x122   :  { %2391 = vmatmul.bf16.vlgmr.msra.gmra.mxu1 %v4440_v22  ;;  %v3416_v56 = vor.u32 %v4088_v47, %v3415_v46  ;;  %v3544_v59 = vor.u32 %v4120_v52, %v3543_v51  ;;  %v3369_v46 = vld [vmem:[#allocation8 + $0x3f8] sm:$0xf0]  ;;  %v4478_v47 = vld [vmem:[#allocation10] sm:$0xf]  ;;  %v3970_v52 = vld [vmem:[#allocation8 + $0xac] sm:$0xf] }
 0x123   :  { %2416 = vmatpush.bf16.msra.mxu3 %v3256_v7  ;;  %v3799_v7 = vld [vmem:[#allocation8 + $0x748] sm:$0xf] }
 0x124   :  { %2423 = vmatpush.bf16.msrb.mxu0 %v3480_v62  ;;  %2403 = vmatpush.bf16.msra.mxu2 %v3128_v3  ;;  %v3688_v62 = vor.u32 %v4156_v55, %v3687_v54  ;;  %v3671_v3 = vld [vmem:[#allocation8 + $0x648] sm:$0xf]  ;;  %v3768_v54 = vor.u32 %v4176_v39, %v3767_v38  ;;  %v3990_v38 = vld [vmem:[#allocation8 + $0x14c] sm:$0xf]  ;;  %v3033_v39 = vld [vmem:[#allocation8 + $0x158] sm:$0xf0] }
 0x125   :  { %2436 = vmatpush.bf16.msrb.mxu1 %v3608_v63  ;;  %v3527_v63 = vld [vmem:[#allocation8 + $0x528] sm:$0xf] }
 0x126   :  { %2417 = vmatmul.bf16.vlgmr.msra.gmra.mxu3 %v4446_v49  ;;  %v3528_v11 = vor.u32 %v4116_v0, %v3527_v63  ;;  %v4070_v63 = vld [vmem:[#allocation8 + $0x3cc] sm:$0xf]  ;;  %v3353_v0 = vld [vmem:[#allocation8 + $0x3d8] sm:$0xf0] }
 0x127   :  { %2461 = vmatpush.bf16.msrb.mxu3 %v3880_v12  ;;  %2404 = vmatmul.bf16.vlgmr.msra.gmra.mxu2 %v4444_v43  ;;  %v4080_v12 = vld [vmem:[#allocation8 + $0x414] sm:$0xf0] }
 0x128   :  { %2448 = vmatpush.bf16.msrb.mxu2 %v3752_v8  ;;  %2424 = vmatpush.bf16.msrb.mxu0 %v3464_v15  ;;  %v4184_v8 = vld [vmem:[#allocation8 + $0x754] sm:$0xf0]  ;;  %v3672_v15 = vor.u32 %v4152_v4, %v3671_v3  ;;  %v3384_v24 = vor.u32 %v4080_v12, %v3383_v10  ;;  %v3966_v3 = vld [vmem:[#allocation8 + $0x8c] sm:$0xf]  ;;  %v2937_v4 = vld [vmem:[#allocation8 + $0x98] sm:$0xf0]  ;;  %v3356_v12 = vor.u32 %v4070_v63, %v3353_v0 }
 0x129   :  { %2437 = vmatpush.bf16.msrb.mxu1 %v3592_v19  ;;  %v4010_v19 = vld [vmem:[#allocation8 + $0x1ec] sm:$0xf]  ;;  %v3800_v20 = vor.u32 %v4184_v8, %v3799_v7  ;;  %v3228_v7 = vor.u32 %v4038_v60, %v3225_v61  ;;  %v3065_v10 = vld [vmem:[#allocation8 + $0x198] sm:$0xf0] }
 0x12a   :  { %v3116_v30 = vor.u32 %v4010_v19, %v3113_v21  ;;  %v3998_v8 = vld [vmem:[#allocation8 + $0x18c] sm:$0xf]  ;;  %v3337_v19 = vld [vmem:[#allocation8 + $0x3b8] sm:$0xf0] }
 0x12b   :  { %2462 = vmatpush.bf16.msrb.mxu3 %v3864_v25  ;;  %v3783_v25 = vld [vmem:[#allocation8 + $0x728] sm:$0xf]  ;;  %v3068_v21 = vor.u32 %v3998_v8, %v3065_v10  ;;  %v4022_v60 = vld [vmem:[#allocation8 + $0x24c] sm:$0xf]  ;;  %v3161_v61 = vld [vmem:[#allocation8 + $0x258] sm:$0xf0] }
 0x12c   :  { %2449 = vmatpush.bf16.msrb.mxu2 %v3736_v23  ;;  %2425 = vmatpush.bf16.msrb.mxu0 %v3448_v28  ;;  %v3655_v23 = vld [vmem:[#allocation8 + $0x628] sm:$0xf]  ;;  %v2988_v28 = vor.u32 %v3978_v16, %v2985_v18  ;;  %v3784_v35 = vor.u32 %v4180_v26, %v3783_v25  ;;  %v2940_v16 = vor.u32 %v3966_v3, %v2937_v4  ;;  %v4066_v18 = vld [vmem:[#allocation8 + $0x3ac] sm:$0xf]  ;;  %v3049_v26 = vld [vmem:[#allocation8 + $0x178] sm:$0xf0] }
 0x12d   :  { %2438 = vmatpush.bf16.msrb.mxu1 %v3576_v31  ;;  %v3656_v31 = vor.u32 %v4148_v2, %v3655_v23  ;;  %v3962_v23 = vld [vmem:[#allocation8 + $0x6c] sm:$0xf]  ;;  %v2921_v2 = vld [vmem:[#allocation8 + $0x78] sm:$0xf0]  ;;  %v3164_v10 = vor.u32 %v4022_v60, %v3161_v61 }
 0x12e   :  { %v3994_v25 = vld [vmem:[#allocation8 + $0x16c] sm:$0xf]  ;;  %v3001_v8 = vld [vmem:[#allocation8 + $0x118] sm:$0xf0] }
 0x12f   :  { %2463 = vmatpush.bf16.msrb.mxu3 %v3848_v37  ;;  %v4144_v37 = vld [vmem:[#allocation8 + $0x614] sm:$0xf0]  ;;  %v4054_v0 = vld [vmem:[#allocation8 + $0x34c] sm:$0xf] }
 0x130   :  { %2450 = vmatpush.bf16.msrb.mxu2 %v3720_v34  ;;  %2426 = vmatpush.bf16.msrb.mxu0 %v3432_v40  ;;  %v3097_v34 = vld [vmem:[#allocation8 + $0x1d8] sm:$0xf0]  ;;  %v4042_v40 = vld [vmem:[#allocation8 + $0x2ec] sm:$0xf]  ;;  %v3640_v51 = vor.u32 %v4144_v37, %v3639_v36 }
 0x131   :  { %2439 = vmatpush.bf16.msrb.mxu1 %v3560_v45  ;;  %v4074_v45 = vld [vmem:[#allocation8 + $0x3ec] sm:$0xf]  ;;  %v3244_v55 = vor.u32 %v4042_v40, %v3241_v50 }
 0x132   :  { %v3372_v58 = vor.u32 %v4074_v45, %v3369_v46  ;;  %v3177_v45 = vld [vmem:[#allocation8 + $0x278] sm:$0xf0]  ;;  %v3950_v3 = vld [vmem:[#allocation8 + $0xc] sm:$0xf] }
 0x133   :  { %2464 = vmatpush.bf16.msrb.mxu3 %v3832_v53  ;;  %v2953_v53 = vld [vmem:[#allocation8 + $0xb8] sm:$0xf0]  ;;  %v4198_v61 = vld [vmem:[#allocation8 + $0x7cc] sm:$0xf] }
 0x134   :  { %2451 = vmatpush.bf16.msrb.mxu2 %v3704_v48  ;;  %2427 = vmatpush.bf16.msrb.mxu0 %v3416_v56  ;;  %v3100_v48 = vor.u32 %v4006_v33, %v3097_v34  ;;  %v4002_v56 = vld [vmem:[#allocation8 + $0x1ac] sm:$0xf]  ;;  %v3052_v33 = vor.u32 %v3994_v25, %v3049_v26 }
 0x135   :  { %2440 = vmatpush.bf16.msrb.mxu1 %v3544_v59  ;;  %v874_v59 = vperm.slane %v4478_v47, 0  ;;  %v3958_v34 = vld [vmem:[#allocation8 + $0x4c] sm:$0xf] }
 0x136   :  { %v4102_v25 = vld [vmem:[#allocation8 + $0x4cc] sm:$0xf] }
 0x137   :  { %2465 = vmatpush.bf16.msrb.mxu3 %v3816_v1  ;;  %v3084_v1 = vor.u32 %v4002_v56, %v3081_v57  ;;  %v3986_v56 = vld [vmem:[#allocation8 + $0x12c] sm:$0xf]  ;;  %v3017_v57 = vld [vmem:[#allocation8 + $0x138] sm:$0xf0] }
 0x138   :  { %2452 = vmatpush.bf16.msrb.mxu2 %v3688_v62  ;;  %2428 = vmatpush.bf16.msrb.mxu0 %v3400_v5  ;;  %v2956_v62 = vor.u32 %v3970_v52, %v2953_v53  ;;  %v3036_v52 = vor.u32 %v3990_v38, %v3033_v39  ;;  %v3954_v53 = vld [vmem:[#allocation8 + $0x2c] sm:$0xf]  ;;  %v3020_v4 = vor.u32 %v3986_v56, %v3017_v57  ;;  %v3753_v39 = vld [vmem:[#allocation8 + $0x6f8] sm:$0xf0] }
 0x139   :  { %2441 = vmatpush.bf16.msrb.mxu1 %v3528_v11  ;;  %v4170_v38 = vld [vmem:[#allocation8 + $0x6ec] sm:$0xf] }
 0x13a   :  { %v4166_v57 = vld [vmem:[#allocation8 + $0x6cc] sm:$0xf] }
 0x13b   :  { %2466 = vmatpush.bf16.msrb.mxu3 %v3800_v20  ;;  %v2171_v5 = vpop.f32.mrf.mxu0  ;;  %v2184_v13 = vpop.f32.mrf.mxu1 }
 0x13c   :  { %2453 = vmatpush.bf16.msrb.mxu2 %v3672_v15  ;;  %2429 = vmatpush.bf16.msrb.mxu0 %v3384_v24  ;;  %v2172_v11 = vadd.f32 %v2171_v5, %v874_v59  ;;  %v3209_v15 = vld [vmem:[#allocation8 + $0x2b8] sm:$0xf0] }
 0x13d   :  { %2442 = vmatpush.bf16.msrb.mxu1 %v3512_v27  ;;  %v3212_v24 = vor.u32 %v4034_v14, %v3209_v15  ;;  %v3340_v27 = vor.u32 %v4066_v18, %v3337_v19  ;;  %v2873_v5 = vld [vmem:[#allocation8 + $0x18] sm:$0xf0] }
 0x13e   :  { %v4485_v20 = vadd.f32 %v2184_v13, %v2172_v11  ;;  %v4106_v11 = vld [vmem:[#allocation8 + $0x4ec] sm:$0xf]  ;;  %v3625_v15 = vld [vmem:[#allocation8 + $0x5f8] sm:$0xf0]  ;;  %v2876_v19 = vor.u32 %v3950_v3, %v2873_v5 }
 0x13f   :  { %2467 = vmatpush.bf16.msrb.mxu3 %v3784_v35  ;;  %2430 = vmatmul.bf16.vlgmr.msrb.gmra.mxu0 %v4453_v6  ;;  %v2905_v35 = vld [vmem:[#allocation8 + $0x58] sm:$0xf0]  ;;  %v4138_v13 = vld [vmem:[#allocation8 + $0x5ec] sm:$0xf] }
 0x140   :  { %2474 = vmatpush.bf16.msra.mxu0 %v2988_v28  ;;  %2454 = vmatpush.bf16.msrb.mxu2 %v3656_v31  ;;  %v4030_v28 = vld [vmem:[#allocation8 + $0x28c] sm:$0xf]  ;;  %v2908_v46 = vor.u32 %v3958_v34, %v2905_v35  ;;  %v3145_v18 = vld [vmem:[#allocation8 + $0x238] sm:$0xf0]  ;;  %v3628_v26 = vor.u32 %v4138_v13, %v3625_v15 }
 0x141   :  { %2487 = vmatpush.bf16.msra.mxu1 %v3116_v30  ;;  %v2924_v30 = vor.u32 %v3962_v23, %v2921_v2  ;;  %v4062_v31 = vld [vmem:[#allocation8 + $0x38c] sm:$0xf]  ;;  %v3196_v37 = vor.u32 %v4030_v28, %v3193_v29  ;;  %v3273_v23 = vld [vmem:[#allocation8 + $0x338] sm:$0xf0] }
 0x142   :  { %2443 = vmatmul.bf16.vlgmr.msrb.gmra.mxu1 %v4456_v9  ;;  %v3324_v40 = vor.u32 %v4062_v31, %v3321_v32  ;;  %v3481_v28 = vld [vmem:[#allocation8 + $0x4d8] sm:$0xf0]  ;;  %v4134_v29 = vld [vmem:[#allocation8 + $0x5cc] sm:$0xf] }
 0x143   :  { %2468 = vmatpush.bf16.msrb.mxu3 %v3768_v54  ;;  %v2173_v36 = vpop.f32.mrf.mxu0  ;;  %v2186_v50 = vpop.f32.mrf.mxu1  ;;  %v2889_v54 = vld [vmem:[#allocation8 + $0x38] sm:$0xf0]  ;;  %v4046_v35 = vld [vmem:[#allocation8 + $0x30c] sm:$0xf] }
 0x144   :  { %2475 = vmatpush.bf16.msra.mxu0 %v2972_v42  ;;  %2455 = vmatpush.bf16.msrb.mxu2 %v3640_v51  ;;  %v4026_v42 = vld [vmem:[#allocation8 + $0x26c] sm:$0xf]  ;;  %v3305_v51 = vld [vmem:[#allocation8 + $0x378] sm:$0xf0]  ;;  %v2892_v63 = vor.u32 %v3954_v53, %v2889_v54  ;;  %v3756_v53 = vor.u32 %v4170_v38, %v3753_v39 }
 0x145   :  { %2488 = vmatpush.bf16.msra.mxu1 %v3100_v48  ;;  %v4058_v48 = vld [vmem:[#allocation8 + $0x36c] sm:$0xf]  ;;  %v3129_v34 = vld [vmem:[#allocation8 + $0x218] sm:$0xf0] }
 0x146   :  { %2469 = vmatmul.bf16.vlgmr.msrb.gmra.mxu3 %v4462_v44  ;;  %v3308_v59 = vor.u32 %v4058_v48, %v3305_v51  ;;  %v4202_v50 = vld [vmem:[#allocation8 + $0x7ec] sm:$0xf]  ;;  %v3465_v51 = vld [vmem:[#allocation8 + $0x4b8] sm:$0xf0] }
 0x147   :  { %2513 = vmatpush.bf16.msra.mxu3 %v3372_v58  ;;  %2456 = vmatmul.bf16.vlgmr.msrb.gmra.mxu2 %v4460_v41  ;;  %v4098_v48 = vld [vmem:[#allocation8 + $0x4ac] sm:$0xf]  ;;  %v3449_v3 = vld [vmem:[#allocation8 + $0x498] sm:$0xf0] }
 0x148   :  { %2500 = vmatpush.bf16.msra.mxu2 %v3244_v55  ;;  %2476 = vmatpush.bf16.msra.mxu0 %v2956_v62  ;;  %v3180_v55 = vor.u32 %v4026_v42, %v3177_v45  ;;  %v3881_v42 = vld [vmem:[#allocation8 + $0x7f8] sm:$0xf0]  ;;  %v4130_v54 = vld [vmem:[#allocation8 + $0x5ac] sm:$0xf]  ;;  %v3468_v60 = vor.u32 %v4098_v48, %v3465_v51 }
 0x149   :  { %2489 = vmatpush.bf16.msra.mxu1 %v3084_v1  ;;  %v4489_v62 = vpop.f32.mrf.mxu3  ;;  %v3289_v1 = vld [vmem:[#allocation8 + $0x358] sm:$0xf0]  ;;  %v3884_v56 = vor.u32 %v4202_v50, %v3881_v42  ;;  %v4194_v13 = vld [vmem:[#allocation8 + $0x7ac] sm:$0xf] }
 0x14a   :  { %v4487_v58 = vpop.f32.mrf.mxu2  ;;  %v3292_v14 = vor.u32 %v4054_v0, %v3289_v1  ;;  %v4094_v1 = vld [vmem:[#allocation8 + $0x48c] sm:$0xf]  ;;  %v3577_v5 = vld [vmem:[#allocation8 + $0x598] sm:$0xf0] }
 0x14b   :  { %2514 = vmatpush.bf16.msra.mxu3 %v3356_v12  ;;  %v3497_v12 = vld [vmem:[#allocation8 + $0x4f8] sm:$0xf0]  ;;  %v4186_v39 = vld [vmem:[#allocation8 + $0x76c] sm:$0xf] }
 0x14c   :  { %2501 = vmatpush.bf16.msra.mxu2 %v3228_v7  ;;  %2477 = vmatpush.bf16.msra.mxu0 %v2940_v16  ;;  %v3982_v7 = vld [vmem:[#allocation8 + $0x10c] sm:$0xf]  ;;  %v3529_v51 = vld [vmem:[#allocation8 + $0x538] sm:$0xf0] }
 0x14d   :  { %2490 = vmatpush.bf16.msra.mxu1 %v3068_v21  ;;  %v4018_v16 = vld [vmem:[#allocation8 + $0x22c] sm:$0xf]  ;;  %v3004_v2 = vor.u32 %v3982_v7, %v3001_v8 }
 0x14e   :  { %v4050_v21 = vld [vmem:[#allocation8 + $0x32c] sm:$0xf] }
 0x14f   :  { %2515 = vmatpush.bf16.msra.mxu3 %v3340_v27  ;;  %v3148_v27 = vor.u32 %v4018_v16, %v3145_v18  ;;  %v3276_v32 = vor.u32 %v4050_v21, %v3273_v23  ;;  %v4162_v8 = vld [vmem:[#allocation8 + $0x6ac] sm:$0xf]  ;;  %v3433_v18 = vld [vmem:[#allocation8 + $0x478] sm:$0xf0] }
 0x150   :  { %2502 = vmatpush.bf16.msra.mxu2 %v3212_v24  ;;  %2478 = vmatpush.bf16.msra.mxu0 %v2924_v30  ;;  %v3500_v24 = vor.u32 %v4106_v11, %v3497_v12  ;;  %v3609_v30 = vld [vmem:[#allocation8 + $0x5d8] sm:$0xf0]  ;;  %v3452_v12 = vor.u32 %v4094_v1, %v3449_v3  ;;  %v4090_v16 = vld [vmem:[#allocation8 + $0x46c] sm:$0xf] }
 0x151   :  { %2491 = vmatpush.bf16.msra.mxu1 %v3052_v33  ;;  %v4014_v33 = vld [vmem:[#allocation8 + $0x20c] sm:$0xf]  ;;  %v2212_v36 = vpop.f32.mrf.mxu3  ;;  %v3612_v45 = vor.u32 %v4134_v29, %v3609_v30  ;;  %v3561_v23 = vld [vmem:[#allocation8 + $0x578] sm:$0xf0] }
 0x152   :  { %v2199_v31 = vpop.f32.mrf.mxu2  ;;  %v4122_v21 = vld [vmem:[#allocation8 + $0x56c] sm:$0xf]  ;;  %v3689_v36 = vld [vmem:[#allocation8 + $0x678] sm:$0xf0] }
 0x153   :  { %2516 = vmatpush.bf16.msra.mxu3 %v3324_v40  ;;  %v3484_v40 = vor.u32 %v4102_v25, %v3481_v28  ;;  %v3436_v25 = vor.u32 %v4090_v16, %v3433_v18  ;;  %v3564_v28 = vor.u32 %v4122_v21, %v3561_v23  ;;  %v4086_v29 = vld [vmem:[#allocation8 + $0x44c] sm:$0xf]  ;;  %v3641_v21 = vld [vmem:[#allocation8 + $0x618] sm:$0xf0] }
 0x154   :  { %2503 = vmatpush.bf16.msra.mxu2 %v3196_v37  ;;  %2479 = vmatpush.bf16.msra.mxu0 %v2908_v46  ;;  %v3257_v37 = vld [vmem:[#allocation8 + $0x318] sm:$0xf0]  ;;  %v3132_v46 = vor.u32 %v4014_v33, %v3129_v34  ;;  %v4118_v31 = vld [vmem:[#allocation8 + $0x54c] sm:$0xf] }
 0x155   :  { %2492 = vmatpush.bf16.msra.mxu1 %v3036_v52  ;;  %v3260_v52 = vor.u32 %v4046_v35, %v3257_v37  ;;  %v4154_v35 = vld [vmem:[#allocation8 + $0x66c] sm:$0xf] }
 0x156   :  { %v4082_v42 = vld [vmem:[#allocation8 + $0x42c] sm:$0xf] }
 0x157   :  { %2517 = vmatpush.bf16.msra.mxu3 %v3308_v59  ;;  %v3737_v59 = vld [vmem:[#allocation8 + $0x6d8] sm:$0xf0]  ;;  %v4114_v48 = vld [vmem:[#allocation8 + $0x52c] sm:$0xf] }
 0x158   :  { %2504 = vmatpush.bf16.msra.mxu2 %v3180_v55  ;;  %2480 = vmatpush.bf16.msra.mxu0 %v2892_v63  ;;  %v3593_v55 = vld [vmem:[#allocation8 + $0x5b8] sm:$0xf0]  ;;  %v4110_v3 = vld [vmem:[#allocation8 + $0x50c] sm:$0xf] }
 0x159   :  { %2493 = vmatpush.bf16.msra.mxu1 %v3020_v4  ;;  %v3865_v63 = vld [vmem:[#allocation8 + $0x7d8] sm:$0xf0]  ;;  %v3596_v0 = vor.u32 %v4130_v54, %v3593_v55  ;;  %v4126_v4 = vld [vmem:[#allocation8 + $0x58c] sm:$0xf] }
 0x15a   :  { %v3580_v15 = vor.u32 %v4126_v4, %v3577_v5  ;;  %v3673_v54 = vld [vmem:[#allocation8 + $0x658] sm:$0xf0] }
 0x15b   :  { %2518 = vmatpush.bf16.msra.mxu3 %v3292_v14  ;;  %v4493_v7 = vpop.f32.mrf.mxu0  ;;  %v4496_v11 = vpop.f32.mrf.mxu1  ;;  %v3849_v14 = vld [vmem:[#allocation8 + $0x7b8] sm:$0xf0] }
 0x15c   :  { %2505 = vmatpush.bf16.msra.mxu2 %v3164_v10  ;;  %2481 = vmatpush.bf16.msra.mxu0 %v2876_v19  ;;  %v3721_v10 = vld [vmem:[#allocation8 + $0x6b8] sm:$0xf0] }
 0x15d   :  { %2494 = vmatpush.bf16.msra.mxu1 %v3004_v2  ;;  %v3724_v19 = vor.u32 %v4162_v8, %v3721_v10  ;;  %v3852_v2 = vor.u32 %v4194_v13, %v3849_v14  ;;  %v3657_v8 = vld [vmem:[#allocation8 + $0x638] sm:$0xf0]  ;;  %v4178_v13 = vld [vmem:[#allocation8 + $0x72c] sm:$0xf] }
 0x15e   :  { %v3785_v14 = vld [vmem:[#allocation8 + $0x738] sm:$0xf0] }
 0x15f   :  { %2519 = vmatpush.bf16.msra.mxu3 %v3276_v32  ;;  %2482 = vmatmul.bf16.vlgmr.msra.gmra.mxu0 %v4437_v17  ;;  %v3740_v17 = vor.u32 %v4166_v57, %v3737_v59  ;;  %v3545_v32 = vld [vmem:[#allocation8 + $0x558] sm:$0xf0]  ;;  %v4182_v57 = vld [vmem:[#allocation8 + $0x74c] sm:$0xf]  ;;  %v3788_v18 = vor.u32 %v4178_v13, %v3785_v14 }
 0x160   :  { %2526 = vmatpush.bf16.msrb.mxu0 %v3500_v24  ;;  %2506 = vmatpush.bf16.msra.mxu2 %v3148_v27  ;;  %v4158_v24 = vld [vmem:[#allocation8 + $0x68c] sm:$0xf]  ;;  %v3833_v27 = vld [vmem:[#allocation8 + $0x798] sm:$0xf0]  ;;  %v3548_v50 = vor.u32 %v4118_v31, %v3545_v32  ;;  %v2198_v32 = vadd.f32 %v4487_v58, %v4485_v20 }
 0x161   :  { %2539 = vmatpush.bf16.msrb.mxu1 %v3628_v26  ;;  %v4190_v26 = vld [vmem:[#allocation8 + $0x78c] sm:$0xf]  ;;  %v3801_v59 = vld [vmem:[#allocation8 + $0x758] sm:$0xf0] }
 0x162   :  { %2495 = vmatmul.bf16.vlgmr.msra.gmra.mxu1 %v4440_v22  ;;  %v3868_v22 = vor.u32 %v4198_v61, %v3865_v63  ;;  %v3836_v34 = vor.u32 %v4190_v26, %v3833_v27  ;;  %v3532_v61 = vor.u32 %v4114_v48, %v3529_v51  ;;  %v4078_v63 = vld [vmem:[#allocation8 + $0x40c] sm:$0xf]  ;;  %v3804_v5 = vor.u32 %v4182_v57, %v3801_v59 }
 0x163   :  { %2520 = vmatpush.bf16.msra.mxu3 %v3260_v52  ;;  %v2225_v33 = vpop.f32.mrf.mxu0  ;;  %v2238_v37 = vpop.f32.mrf.mxu1 }
 0x164   :  { %2527 = vmatpush.bf16.msrb.mxu0 %v3484_v40  ;;  %2507 = vmatpush.bf16.msra.mxu2 %v3132_v46  ;;  %v3817_v40 = vld [vmem:[#allocation8 + $0x778] sm:$0xf0]  ;;  %v3692_v46 = vor.u32 %v4154_v35, %v3689_v36  ;;  %v2211_v36 = vadd.f32 %v4489_v62, %v2198_v32 }
 0x165   :  { %2540 = vmatpush.bf16.msrb.mxu1 %v3612_v45  ;;  %v3401_v45 = vld [vmem:[#allocation8 + $0x438] sm:$0xf0]  ;;  %v3820_v52 = vor.u32 %v4186_v39, %v3817_v40 }
 0x166   :  { %2521 = vmatmul.bf16.vlgmr.msra.gmra.mxu3 %v4446_v49  ;;  %v3417_v49 = vld [vmem:[#allocation8 + $0x458] sm:$0xf0] }
 0x167   :  { %2565 = vmatpush.bf16.msrb.mxu3 %v3884_v56  ;;  %2508 = vmatmul.bf16.vlgmr.msra.gmra.mxu2 %v4444_v43  ;;  %v3705_v43 = vld [vmem:[#allocation8 + $0x698] sm:$0xf0]  ;;  %v3420_v38 = vor.u32 %v4086_v29, %v3417_v49  ;;  %v3404_v56 = vor.u32 %v4082_v42, %v3401_v45 }
 0x168   :  { %2552 = vmatpush.bf16.msrb.mxu2 %v3756_v53  ;;  %2528 = vmatpush.bf16.msrb.mxu0 %v3468_v60  ;;  %v3708_v30 = vor.u32 %v4158_v24, %v3705_v43  ;;  %v4150_v53 = vld [vmem:[#allocation8 + $0x64c] sm:$0xf]  ;;  %v3769_v24 = vld [vmem:[#allocation8 + $0x718] sm:$0xf0] }
 0x169   :  { %2541 = vmatpush.bf16.msrb.mxu1 %v3596_v0  ;;  %v4499_v55 = vpop.f32.mrf.mxu2  ;;  %v4501_v60 = vpop.f32.mrf.mxu3  ;;  %v3385_v0 = vld [vmem:[#allocation8 + $0x418] sm:$0xf0]  ;;  %v3676_v1 = vor.u32 %v4150_v53, %v3673_v54 }
 0x16b   :  { %2566 = vmatpush.bf16.msrb.mxu3 %v3868_v22  ;;  %v2275_v4 = vpop.f32.mrf.mxu0  ;;  %v4146_v22 = vld [vmem:[#allocation8 + $0x62c] sm:$0xf]  ;;  %v2288_v10 = vpop.f32.mrf.mxu1 }
 0x16c   :  { %2553 = vmatpush.bf16.msrb.mxu2 %v3740_v17  ;;  %2529 = vmatpush.bf16.msrb.mxu0 %v3452_v12  ;;  %v3513_v17 = vld [vmem:[#allocation8 + $0x518] sm:$0xf0]  ;;  %v3388_v12 = vor.u32 %v4078_v63, %v3385_v0  ;;  %v3660_v16 = vor.u32 %v4146_v22, %v3657_v8 }
 0x16d   :  { %2542 = vmatpush.bf16.msrb.mxu1 %v3580_v15  ;;  %v3516_v15 = vor.u32 %v4110_v3, %v3513_v17 }
 0x16f   :  { %2567 = vmatpush.bf16.msrb.mxu3 %v3852_v2  ;;  %v4174_v2 = vld [vmem:[#allocation8 + $0x70c] sm:$0xf] }
 0x170   :  { %2554 = vmatpush.bf16.msrb.mxu2 %v3724_v19  ;;  %2530 = vmatpush.bf16.msrb.mxu0 %v3436_v25  ;;  %v4142_v19 = vld [vmem:[#allocation8 + $0x60c] sm:$0xf]  ;;  %v875_v25 = vperm.slane %v4478_v47, 1 }
 0x171   :  { %2543 = vmatpush.bf16.msrb.mxu1 %v3564_v28  ;;  %v2251_v23 = vpop.f32.mrf.mxu2  ;;  %v2264_v43 = vpop.f32.mrf.mxu3  ;;  %v3644_v26 = vor.u32 %v4142_v19, %v3641_v21  ;;  %v3772_v28 = vor.u32 %v4174_v2, %v3769_v24 }
 0x172   :  { %v2276_v49 = vadd.f32 %v2275_v4, %v875_v25  ;;  %v877_v25 = vperm.slane %v4478_v47, 3 }
 0x173   :  { %2568 = vmatpush.bf16.msrb.mxu3 %v3836_v34  ;;  %v2277_v27 = vpop.f32.mrf.mxu0  ;;  %v2290_v29 = vpop.f32.mrf.mxu1 }
 0x174   :  { %2555 = vmatpush.bf16.msrb.mxu2 %v3708_v30  ;;  %2531 = vmatpush.bf16.msrb.mxu0 %v3420_v38  ;;  %v2289_v33 = vadd.f32 %v2288_v10, %v2276_v49 }
 0x175   :  { %2544 = vmatpush.bf16.msrb.mxu1 %v3548_v50 }
 0x177   :  { %2569 = vmatpush.bf16.msrb.mxu3 %v3820_v52 }
 0x178   :  { %2556 = vmatpush.bf16.msrb.mxu2 %v3692_v46  ;;  %2532 = vmatpush.bf16.msrb.mxu0 %v3404_v56 }
 0x179   :  { %2545 = vmatpush.bf16.msrb.mxu1 %v3532_v61  ;;  %v2301_v30 = vpop.f32.mrf.mxu2  ;;  %v2314_v31 = vpop.f32.mrf.mxu3 }
 0x17a   :  { %v2302_v34 = vadd.f32 %v2301_v30, %v2289_v33 }
 0x17b   :  { %2570 = vmatpush.bf16.msrb.mxu3 %v3804_v5 }
 0x17c   :  { %2557 = vmatpush.bf16.msrb.mxu2 %v3676_v1  ;;  %2533 = vmatpush.bf16.msrb.mxu0 %v3388_v12  ;;  %v2315_v37 = vadd.f32 %v2314_v31, %v2302_v34 }
 0x17d   :  { %2546 = vmatpush.bf16.msrb.mxu1 %v3516_v15 }
 0x17f   :  { %2571 = vmatpush.bf16.msrb.mxu3 %v3788_v18  ;;  %2534 = vmatmul.bf16.vlgmr.msrb.gmra.mxu0 %v4453_v6  ;;  %v2327_v6 = vpop.f32.mrf.mxu0  ;;  %v2340_v35 = vpop.f32.mrf.mxu1 }
 0x180   :  { %2558 = vmatpush.bf16.msrb.mxu2 %v3660_v16  ;;  %2547 = vmatmul.bf16.vlgmr.msrb.gmra.mxu1 %v4456_v9  ;;  %v2224_v9 = vadd.f32 %v4493_v7, %v2211_v36  ;;  %v2328_v50 = vadd.f32 %v2327_v6, %v2315_v37 }
 0x181   :  { %v2303_v38 = vpop.f32.mrf.mxu2  ;;  %v2316_v39 = vpop.f32.mrf.mxu3 }
 0x182   :  { %v2237_v40 = vadd.f32 %v4496_v11, %v2224_v9  ;;  %v2341_v58 = vadd.f32 %v2340_v35, %v2328_v50  ;;  %v876_v11 = vperm.slane %v4478_v47, 2 }
 0x183   :  { %2572 = vmatpush.bf16.msrb.mxu3 %v3772_v28 }
 0x184   :  { %2559 = vmatpush.bf16.msrb.mxu2 %v3644_v26  ;;  %v2250_v20 = vadd.f32 %v4499_v55, %v2237_v40 }
 0x186   :  { %2573 = vmatmul.bf16.vlgmr.msrb.gmra.mxu3 %v4462_v44  ;;  %v2263_v46 = vadd.f32 %v4501_v60, %v2250_v20 }
 0x187   :  { %2560 = vmatmul.bf16.vlgmr.msrb.gmra.mxu2 %v4460_v41  ;;  %v2329_v41 = vpop.f32.mrf.mxu0  ;;  %v2342_v42 = vpop.f32.mrf.mxu1 }
 0x188   :  { %v2578_v62 = vmax.f32 %v2263_v46, 0.0 }
 0x189   :  { %v2366_v44 = vpop.f32.mrf.mxu3 }
 0x18a   :  { %v2353_v45 = vpop.f32.mrf.mxu2 }
 0x18b   :  { %v2354_v48 = vadd.f32 %v2353_v45, %v2341_v58 }
 0x18d   :  { %v2367_v51 = vadd.f32 %v2366_v44, %v2354_v48 }
 0x18f   :  { %v2579_v52 = vmax.f32 %v2367_v51, 0.0 }
 0x191   :  { %v2582_v7 = vpack.c.bf16 %v2579_v52, %v2578_v62  ;;  %v2368_v54 = vpop.f32.mrf.mxu3 }
 0x192   :  { %v2355_v53 = vpop.f32.mrf.mxu2 }
 0x193   :  { %2584 = vst [vmem:[#allocation11] sm:$0xff] %v2582_v7 }
 0x19c   :  { %v2379_v56 = vpop.f32.mrf.mxu0 }
 0x19d   :  { %v2380_v57 = vadd.f32 %v2379_v56, %v876_v11 }
 0x19f   :  { %v2392_v59 = vpop.f32.mrf.mxu1 }
 0x1a0   :  { %v2393_v61 = vadd.f32 %v2392_v59, %v2380_v57 }
 0x1a4   :  { %v2381_v55 = vpop.f32.mrf.mxu0 }
 0x1a7   :  { %v2394_v63 = vpop.f32.mrf.mxu1 }
 0x1a9   :  { %v2418_v3 = vpop.f32.mrf.mxu3 }
 0x1aa   :  { %v2405_v0 = vpop.f32.mrf.mxu2 }
 0x1ab   :  { %v2406_v1 = vadd.f32 %v2405_v0, %v2393_v61 }
 0x1ad   :  { %v2419_v60 = vadd.f32 %v2418_v3, %v2406_v1 }
 0x1b1   :  { %v2420_v4 = vpop.f32.mrf.mxu3 }
 0x1b2   :  { %v2407_v17 = vpop.f32.mrf.mxu2 }
 0x1bc   :  { %v2431_v5 = vpop.f32.mrf.mxu0 }
 0x1bd   :  { %v2432_v22 = vadd.f32 %v2431_v5, %v2419_v60 }
 0x1bf   :  { %v2444_v8 = vpop.f32.mrf.mxu1 }
 0x1c0   :  { %v2445_v10 = vadd.f32 %v2444_v8, %v2432_v22 }
 0x1c4   :  { %v2433_v12 = vpop.f32.mrf.mxu0 }
 0x1c7   :  { %v2446_v13 = vpop.f32.mrf.mxu1 }
 0x1c9   :  { %v2470_v15 = vpop.f32.mrf.mxu3 }
 0x1ca   :  { %v2457_v14 = vpop.f32.mrf.mxu2 }
 0x1cb   :  { %v2458_v6 = vadd.f32 %v2457_v14, %v2445_v10 }
 0x1cd   :  { %v2471_v37 = vadd.f32 %v2470_v15, %v2458_v6 }
 0x1cf   :  { %v2580_v47 = vmax.f32 %v2471_v37, 0.0 }
 0x1d1   :  { %v2472_v18 = vpop.f32.mrf.mxu3 }
 0x1d2   :  { %v2459_v16 = vpop.f32.mrf.mxu2 }
 0x1dc   :  { %v2483_v19 = vpop.f32.mrf.mxu0 }
 0x1dd   :  { %v2484_v28 = vadd.f32 %v2483_v19, %v877_v25 }
 0x1df   :  { %v2496_v21 = vpop.f32.mrf.mxu1 }
 0x1e0   :  { %v2497_v29 = vadd.f32 %v2496_v21, %v2484_v28 }
 0x1e4   :  { %v2485_v23 = vpop.f32.mrf.mxu0 }
 0x1e7   :  { %v2498_v2 = vpop.f32.mrf.mxu1 }
 0x1e9   :  { %v2522_v43 = vpop.f32.mrf.mxu3 }
 0x1ea   :  { %v2509_v24 = vpop.f32.mrf.mxu2 }
 0x1eb   :  { %v2510_v30 = vadd.f32 %v2509_v24, %v2497_v29 }
 0x1ed   :  { %v2523_v32 = vadd.f32 %v2522_v43, %v2510_v30 }
 0x1f1   :  { %v2524_v27 = vpop.f32.mrf.mxu3 }
 0x1f2   :  { %v2511_v26 = vpop.f32.mrf.mxu2 }
 0x1fc   :  { %v2535_v49 = vpop.f32.mrf.mxu0 }
 0x1fd   :  { %v2548_v31 = vpop.f32.mrf.mxu1  ;;  %v2536_v33 = vadd.f32 %v2535_v49, %v2523_v32 }
 0x1ff   :  { %v2549_v36 = vadd.f32 %v2548_v31, %v2536_v33 }
 0x204   :  { %v2537_v34 = vpop.f32.mrf.mxu0 }
 0x205   :  { %v2550_v35 = vpop.f32.mrf.mxu1 }
 0x209   :  { %v2574_v39 = vpop.f32.mrf.mxu3 }
 0x20a   :  { %v2561_v9 = vpop.f32.mrf.mxu2 }
 0x20b   :  { %v2562_v38 = vadd.f32 %v2561_v9, %v2549_v36 }
 0x20d   :  { %v2575_v40 = vadd.f32 %v2574_v39, %v2562_v38 }
 0x20f   :  { %v2581_v50 = vmax.f32 %v2575_v40, 0.0 }
 0x211   :  { %v2583_v41 = vpack.c.bf16 %v2581_v50, %v2580_v47  ;;  %v2576_v20 = vpop.f32.mrf.mxu3 }
 0x212   :  { %v2563_v42 = vpop.f32.mrf.mxu2 }
 0x213   :  { %2585 = vst [vmem:[#allocation11 + $0x8] sm:$0xff] %v2583_v41 }
 0x214   :  { %2596 = dma.vmem_to_hbm [thread:$0]  %s2592_s4, 256, %s2594_s21, [#allocation4]  }
 0x215   :  { %4365 = dma.done.wait [#allocation4], 256  }
 0x216   :  { %4366 = vsyncadd [#allocation4], 4294967040 }
 0x217   :  { %2601 = vsyncpa [#allocation3], 1 }
 0x218   :  { %2602 = vsyncpa [#allocation6], 1 }
 0x219   :  { %2603 = vsyncpa [#allocation9], 1 }
 0x21a   :  { %2604 = vsyncpa [#allocation4], 1 }

</bundles_post_ra>
